<compile_context>
chip_gen: v5e
topology: v5e:2x2
jax: 0.10.0
libtpu: 0.0.40
codegen_flags: <defaults>
</compile_context>

<pallas_src>
import math

import jax
import jax.numpy as jnp
from jax.experimental import pallas as pl
from jax.experimental.pallas import tpu as pltpu

# ---------------- model config (small, consistent with the forward) ----------
BATCH = 2
SEQ = 8
HIDDEN = 32
N_HEADS = 4
HEAD_DIM = HIDDEN // N_HEADS
INTERMEDIATE = 64
N_LAYERS = 2
VOCAB = 100
MAX_POS = 32
NUM_LABELS = 5
DEC_PAD = 128                      # lane-dense padded label dimension
LN_EPS = 1e-5
PAD_IDX = 1                        # RoBERTa padding idx (position offset)
ATTN_SCALE = 1.0 / math.sqrt(HEAD_DIM)
NEG_INF = -1e30
INV_SQRT2 = 0.7071067811865476

# rows of the packed per-layer vector bundle
_BO, _LN1G, _LN1B, _BO2, _LN2G, _LN2B = range(6)


# ============================ fused Pallas kernel ============================
def _layernorm(x, g, b):
    """f32 layernorm over the last axis (biased variance, like torch)."""
    mean = jnp.mean(x, axis=-1, keepdims=True)
    var = jnp.mean((x - mean) ** 2, axis=-1, keepdims=True)
    return (x - mean) * jax.lax.rsqrt(var + LN_EPS) * g + b


def _mm(x_f32, w_bf16):
    """bf16 MXU matmul with f32 accumulation."""
    return jnp.dot(x_f32.astype(jnp.bfloat16), w_bf16,
                   preferred_element_type=jnp.float32)


def _split_heads(m_f32):
    """(B*S, H) f32 -> (N_HEADS*B, S, HD) bf16, head-major on the batch axis.

    Uses only lane slices, leading-dim reshapes and a leading-dim concat
    (no in-kernel transpose)."""
    parts = [m_f32[:, h * HEAD_DIM:(h + 1) * HEAD_DIM]
             .reshape(BATCH, SEQ, HEAD_DIM) for h in range(N_HEADS)]
    return jnp.concatenate(parts, axis=0).astype(jnp.bfloat16)


def _merge_heads(c_f32):
    """(N_HEADS*B, S, HD) f32 -> (B*S, H) f32."""
    parts = [c_f32[h * BATCH:(h + 1) * BATCH].reshape(BATCH * SEQ, HEAD_DIM)
             for h in range(N_HEADS)]
    return jnp.concatenate(parts, axis=-1)


def fused_transformer_kernel(
        x_emb_ref, emb_ln_ref,
        wqkv_ref, bqkv_ref, wo_ref, wi_ref, bi_ref, wo2_ref, vec_ref,
        pool_w_ref, pool_b_ref, dec_w_ref, dec_b_ref,
        out_ref):
    """Single grid step: whole batch + all layers fused in one invocation."""
    # ---- embeddings layernorm ----
    x = _layernorm(x_emb_ref[...].astype(jnp.float32),
                   emb_ln_ref[0:1, :], emb_ln_ref[1:2, :])       # (B*S, H) f32

    # ---- encoder layers: static unrolled loop over stacked weights ----
    for l in range(N_LAYERS):
        vec = vec_ref[l]                                         # (6, H) f32

        # fused QKV projection; Q columns were pre-scaled by 1/sqrt(d) at init
        qkv = _mm(x, wqkv_ref[l]) + bqkv_ref[l]                  # (B*S, 3H)

        q3 = _split_heads(qkv[:, 0 * HIDDEN:1 * HIDDEN])         # (NH*B, S, HD)
        k3 = _split_heads(qkv[:, 1 * HIDDEN:2 * HIDDEN])
        v3 = _split_heads(qkv[:, 2 * HIDDEN:3 * HIDDEN])

        # one batched score contraction over all (head, batch) pairs
        s = jnp.einsum('bqd,bkd->bqk', q3, k3,
                       preferred_element_type=jnp.float32)       # (NH*B, S, S)
        s = s - jnp.max(s, axis=-1, keepdims=True)
        p = jnp.exp(s)
        p = p * pl.reciprocal(jnp.sum(p, axis=-1, keepdims=True), approx=True)
        ctx3 = jnp.einsum('bqk,bkd->bqd', p.astype(jnp.bfloat16), v3,
                          preferred_element_type=jnp.float32)    # (NH*B, S, HD)
        ctx = _merge_heads(ctx3)                                 # (B*S, H) f32

        # attention output projection + post-LN residual
        attn_out = _mm(ctx, wo_ref[l]) + vec[_BO:_BO + 1, :]
        x = _layernorm(attn_out + x,
                       vec[_LN1G:_LN1G + 1, :], vec[_LN1B:_LN1B + 1, :])

        # FFN: exact (erf) GELU, divide replaced by constant multiply
        inter = _mm(x, wi_ref[l]) + bi_ref[l]
        inter = 0.5 * inter * (1.0 + jax.lax.erf(inter * INV_SQRT2))
        ffn_out = _mm(inter, wo2_ref[l]) + vec[_BO2:_BO2 + 1, :]
        x = _layernorm(ffn_out + x,
                       vec[_LN2G:_LN2G + 1, :], vec[_LN2B:_LN2B + 1, :])

    # ---- pooler on the CLS token of each batch element (rows 0, S, ...) ----
    cls = jnp.concatenate([x[b * SEQ:b * SEQ + 1, :] for b in range(BATCH)],
                          axis=0)                                # (B, H)
    pooled = jnp.tanh(_mm(cls, pool_w_ref[...]) + pool_b_ref[...])

    # ---- decoder + softmax (lane-dense 128-wide padded output) ----
    logits = _mm(pooled, dec_w_ref[...]) + dec_b_ref[...]        # (B, 128)
    logits = logits - jnp.max(logits, axis=-1, keepdims=True)
    e = jnp.exp(logits)
    # exact divide so output rows sum to 1 to f32 precision
    out_ref[...] = (e / jnp.sum(e, axis=-1, keepdims=True)).astype(out_ref.dtype)


# ============================== parameter init ===============================
def init_params(key):
    def nrm(k, shape, scale=0.02):
        return scale * jax.random.normal(k, shape, dtype=jnp.float32)

    keys = iter(jax.random.split(key, 32))
    bf = jnp.bfloat16

    # fused QKV with the attention scale folded into the Q third
    wqkv = nrm(next(keys), (N_LAYERS, HIDDEN, 3 * HIDDEN))
    wqkv = wqkv.at[:, :, :HIDDEN].multiply(ATTN_SCALE)
    bqkv = jnp.zeros((N_LAYERS, 1, 3 * HIDDEN), jnp.float32)
    bqkv = bqkv.at[:, :, :HIDDEN].multiply(ATTN_SCALE)

    # packed per-layer H-wide vectors: [bo, ln1_g, ln1_b, bo2, ln2_g, ln2_b]
    zeros_h = jnp.zeros((N_LAYERS, HIDDEN), jnp.float32)
    ones_h = jnp.ones((N_LAYERS, HIDDEN), jnp.float32)
    vec = jnp.stack([zeros_h, ones_h, zeros_h, zeros_h, ones_h, zeros_h],
                    axis=1)                                      # (L, 6, H)

    p = {
        # embeddings (f32; gather happens in the wrapper)
        "word_emb": nrm(next(keys), (VOCAB, HIDDEN)),
        "pos_emb": nrm(next(keys), (MAX_POS, HIDDEN)),
        "type_emb": nrm(next(keys), (1, HIDDEN)),
        "emb_ln": jnp.stack([jnp.ones((HIDDEN,), jnp.float32),
                             jnp.zeros((HIDDEN,), jnp.float32)], axis=0),
        # stacked per-layer weights: bf16 matmul operands, f32 biases / LN
        "wqkv": wqkv.astype(bf),
        "bqkv": bqkv,
        "wo": nrm(next(keys), (N_LAYERS, HIDDEN, HIDDEN)).astype(bf),
        "wi": nrm(next(keys), (N_LAYERS, HIDDEN, INTERMEDIATE)).astype(bf),
        "bi": jnp.zeros((N_LAYERS, 1, INTERMEDIATE), jnp.float32),
        "wo2": nrm(next(keys), (N_LAYERS, INTERMEDIATE, HIDDEN)).astype(bf),
        "vec": vec,
        # pooler
        "pool_w": nrm(next(keys), (HIDDEN, HIDDEN)).astype(bf),
        "pool_b": jnp.zeros((1, HIDDEN), jnp.float32),
    }
    # decoder, padded to 128 lanes for lane-dense stores; padding columns get
    # zero weight and -inf bias so their softmax probability is exactly zero.
    dec_w = nrm(next(keys), (HIDDEN, NUM_LABELS))
    p["dec_w"] = (jnp.zeros((HIDDEN, DEC_PAD), jnp.float32)
                  .at[:, :NUM_LABELS].set(dec_w).astype(bf))
    p["dec_b"] = (jnp.full((1, DEC_PAD), NEG_INF, jnp.float32)
                  .at[:, :NUM_LABELS].set(0.0))
    return p


# ================================ forward pass ===============================
def _full_spec(shape):
    """Whole array resident as a single block (grid=(1,))."""
    nd = len(shape)
    return pl.BlockSpec(shape, lambda i, _nd=nd: (0,) * _nd)


def transformer_forward(params, input_ids, attention_mask):
    # attention_mask accepted for signature parity with the torch module, but
    # (exactly like the torch forward) it is NOT passed into the encoder.
    del attention_mask
    B, S = input_ids.shape

    # TODO(synk): embedding row-gather kept as one XLA op in the wrapper; at
    # real sizes it could be pulled into the kernel via scalar prefetch.
    positions = PAD_IDX + 1 + jnp.arange(S, dtype=jnp.int32)   # RoBERTa offset
    x_emb = (jnp.take(params["word_emb"], input_ids, axis=0)
             + jnp.take(params["pos_emb"], positions, axis=0)[None, :, :]
             + params["type_emb"].reshape(1, 1, HIDDEN)
             ).reshape(B * S, HIDDEN)                          # (B*S, H) f32

    operands = (x_emb, params["emb_ln"],
                params["wqkv"], params["bqkv"], params["wo"], params["wi"],
                params["bi"], params["wo2"], params["vec"],
                params["pool_w"], params["pool_b"],
                params["dec_w"], params["dec_b"])

    probs_padded = pl.pallas_call(
        fused_transformer_kernel,
        out_shape=jax.ShapeDtypeStruct((B, DEC_PAD), jnp.float32),
        grid_spec=pltpu.PrefetchScalarGridSpec(
            num_scalar_prefetch=0,
            grid=(1,),
            in_specs=[_full_spec(op.shape) for op in operands],
            out_specs=_full_spec((B, DEC_PAD)),
            scratch_shapes=[]),
        compiler_params=pltpu.CompilerParams(
            dimension_semantics=("arbitrary",)),
    )(*operands)

    # padding columns have exactly-zero probability; real labels unchanged.
    return probs_padded[:, :NUM_LABELS]


# ==================================== main ===================================
if __name__ == "__main__":
    key = jax.random.PRNGKey(0)
    pkey, ikey = jax.random.split(key)

    params = init_params(pkey)
    input_ids = jax.random.randint(ikey, (BATCH, SEQ), 3, VOCAB, dtype=jnp.int32)
    attention_mask = jnp.ones((BATCH, SEQ), dtype=jnp.int32)

    fwd = jax.jit(transformer_forward)
    out = jax.block_until_ready(fwd(params, input_ids, attention_mask))

    assert out.shape == (BATCH, NUM_LABELS)
    row_sums = jax.block_until_ready(jnp.sum(out, axis=-1))
    assert bool(jnp.all(jnp.abs(row_sums - 1.0) < 1e-4))

    # TODO(synk): loading actual pretrained `roberta-large` weights has no
    # in-script equivalent; encoder weights are synthetic but shape-faithful.
    print("KERNEL_OK")
</pallas_src>

<mosaic_0001>
module attributes {stable_mosaic.version = 11 : i64} {
  func.func @fused_transformer_kernel(%arg0: i32, %arg1: memref<16x32xf32, #tpu.memory_space<vmem>>, %arg2: memref<2x32xf32, #tpu.memory_space<vmem>>, %arg3: memref<2x32x96xbf16, #tpu.memory_space<vmem>>, %arg4: memref<2x1x96xf32, #tpu.memory_space<vmem>>, %arg5: memref<2x32x32xbf16, #tpu.memory_space<vmem>>, %arg6: memref<2x32x64xbf16, #tpu.memory_space<vmem>>, %arg7: memref<2x1x64xf32, #tpu.memory_space<vmem>>, %arg8: memref<2x64x32xbf16, #tpu.memory_space<vmem>>, %arg9: memref<2x6x32xf32, #tpu.memory_space<vmem>>, %arg10: memref<32x32xbf16, #tpu.memory_space<vmem>>, %arg11: memref<1x32xf32, #tpu.memory_space<vmem>>, %arg12: memref<32x128xbf16, #tpu.memory_space<vmem>>, %arg13: memref<1x128xf32, #tpu.memory_space<vmem>>, %arg14: memref<2x128xf32, #tpu.memory_space<vmem>>) attributes {dimension_semantics = [#tpu.dimension_semantics<arbitrary>], iteration_bounds = array<i64: 1>, scalar_prefetch = 0 : i64, scratch_operands = 0 : i64, tpu.core_type = #tpu.core_type<tc>, window_params = [{pipeline_mode = #tpu.pipeline_mode<synchronous>, transform_indices = @transform_0, window_bounds = array<i64: 16, 32>}, {pipeline_mode = #tpu.pipeline_mode<synchronous>, transform_indices = @transform_1, window_bounds = array<i64: 2, 32>}, {pipeline_mode = #tpu.pipeline_mode<synchronous>, transform_indices = @transform_2, window_bounds = array<i64: 2, 32, 96>}, {pipeline_mode = #tpu.pipeline_mode<synchronous>, transform_indices = @transform_3, window_bounds = array<i64: 2, 1, 96>}, {pipeline_mode = #tpu.pipeline_mode<synchronous>, transform_indices = @transform_4, window_bounds = array<i64: 2, 32, 32>}, {pipeline_mode = #tpu.pipeline_mode<synchronous>, transform_indices = @transform_5, window_bounds = array<i64: 2, 32, 64>}, {pipeline_mode = #tpu.pipeline_mode<synchronous>, transform_indices = @transform_6, window_bounds = array<i64: 2, 1, 64>}, {pipeline_mode = #tpu.pipeline_mode<synchronous>, transform_indices = @transform_7, window_bounds = array<i64: 2, 64, 32>}, {pipeline_mode = #tpu.pipeline_mode<synchronous>, transform_indices = @transform_8, window_bounds = array<i64: 2, 6, 32>}, {pipeline_mode = #tpu.pipeline_mode<synchronous>, transform_indices = @transform_9, window_bounds = array<i64: 32, 32>}, {pipeline_mode = #tpu.pipeline_mode<synchronous>, transform_indices = @transform_10, window_bounds = array<i64: 1, 32>}, {pipeline_mode = #tpu.pipeline_mode<synchronous>, transform_indices = @transform_11, window_bounds = array<i64: 32, 128>}, {pipeline_mode = #tpu.pipeline_mode<synchronous>, transform_indices = @transform_12, window_bounds = array<i64: 1, 128>}, {pipeline_mode = #tpu.pipeline_mode<synchronous>, transform_indices = @transform_13, window_bounds = array<i64: 2, 128>}]} {
    %c0 = arith.constant 0 : index
    %c0_0 = arith.constant 0 : index
    %0 = vector.load %arg1[%c0, %c0_0] : memref<16x32xf32, #tpu.memory_space<vmem>>, vector<16x32xf32>
    %c0_1 = arith.constant 0 : index
    %c0_2 = arith.constant 0 : index
    %1 = vector.load %arg2[%c0_1, %c0_2] : memref<2x32xf32, #tpu.memory_space<vmem>>, vector<1x32xf32>
    %c1 = arith.constant 1 : index
    %c0_3 = arith.constant 0 : index
    %2 = vector.load %arg2[%c1, %c0_3] : memref<2x32xf32, #tpu.memory_space<vmem>>, vector<1x32xf32>
    %cst = arith.constant dense<0.000000e+00> : vector<16xf32>
    %3 = vector.multi_reduction <add>, %0, %cst [1] : vector<16x32xf32> to vector<16xf32>
    %4 = vector.shape_cast %3 : vector<16xf32> to vector<16x1xf32>
    %cst_4 = arith.constant 3.200000e+01 : f32
    %5 = vector.broadcast %cst_4 : f32 to vector<16x1xf32>
    %6 = arith.divf %4, %5 : vector<16x1xf32>
    %7 = vector.broadcast %6 : vector<16x1xf32> to vector<16x32xf32>
    %8 = arith.subf %0, %7 : vector<16x32xf32>
    %9 = arith.mulf %8, %8 : vector<16x32xf32>
    %cst_5 = arith.constant dense<0.000000e+00> : vector<16xf32>
    %10 = vector.multi_reduction <add>, %9, %cst_5 [1] : vector<16x32xf32> to vector<16xf32>
    %11 = vector.shape_cast %10 : vector<16xf32> to vector<16x1xf32>
    %cst_6 = arith.constant 3.200000e+01 : f32
    %12 = vector.broadcast %cst_6 : f32 to vector<16x1xf32>
    %13 = arith.divf %11, %12 : vector<16x1xf32>
    %14 = vector.broadcast %6 : vector<16x1xf32> to vector<16x32xf32>
    %15 = arith.subf %0, %14 : vector<16x32xf32>
    %cst_7 = arith.constant 9.99999974E-6 : f32
    %16 = vector.broadcast %cst_7 : f32 to vector<16x1xf32>
    %17 = arith.addf %13, %16 : vector<16x1xf32>
    %18 = math.rsqrt %17 : vector<16x1xf32>
    %19 = vector.broadcast %18 : vector<16x1xf32> to vector<16x32xf32>
    %20 = arith.mulf %15, %19 : vector<16x32xf32>
    %21 = vector.broadcast %1 : vector<1x32xf32> to vector<16x32xf32>
    %22 = arith.mulf %20, %21 : vector<16x32xf32>
    %23 = vector.broadcast %2 : vector<1x32xf32> to vector<16x32xf32>
    %24 = arith.addf %22, %23 : vector<16x32xf32>
    %c0_8 = arith.constant 0 : index
    %c0_9 = arith.constant 0 : index
    %c0_10 = arith.constant 0 : index
    %25 = vector.load %arg9[%c0_8, %c0_9, %c0_10] : memref<2x6x32xf32, #tpu.memory_space<vmem>>, vector<1x6x32xf32>
    %26 = vector.shape_cast %25 : vector<1x6x32xf32> to vector<6x32xf32>
    %c0_11 = arith.constant 0 : index
    %c0_12 = arith.constant 0 : index
    %c0_13 = arith.constant 0 : index
    %27 = vector.load %arg3[%c0_11, %c0_12, %c0_13] : memref<2x32x96xbf16, #tpu.memory_space<vmem>>, vector<1x32x96xbf16>
    %28 = vector.shape_cast %27 : vector<1x32x96xbf16> to vector<32x96xbf16>
    %29 = arith.truncf %24 : vector<16x32xf32> to vector<16x32xbf16>
    %cst_14 = arith.constant dense<0.000000e+00> : vector<16x96xf32>
    %30 = tpu.matmul %29, %28, %cst_14 {dimension_numbers = #tpu.dot_dimension_numbers<[1], [0], [0], [1], [0, 0, 1, 1], [], []>} : vector<16x32xbf16>, vector<32x96xbf16>, vector<16x96xf32> -> vector<16x96xf32>
    %c0_15 = arith.constant 0 : index
    %c0_16 = arith.constant 0 : index
    %c0_17 = arith.constant 0 : index
    %31 = vector.load %arg4[%c0_15, %c0_16, %c0_17] : memref<2x1x96xf32, #tpu.memory_space<vmem>>, vector<1x1x96xf32>
    %32 = vector.shape_cast %31 : vector<1x1x96xf32> to vector<1x96xf32>
    %33 = vector.broadcast %32 : vector<1x96xf32> to vector<16x96xf32>
    %34 = arith.addf %30, %33 : vector<16x96xf32>
    %35 = vector.extract_strided_slice %34 {offsets = [0, 0], sizes = [16, 32], strides = [1, 1]} : vector<16x96xf32> to vector<16x32xf32>
    %36 = vector.extract_strided_slice %35 {offsets = [0, 0], sizes = [16, 8], strides = [1, 1]} : vector<16x32xf32> to vector<16x8xf32>
    %37 = vector.shape_cast %36 : vector<16x8xf32> to vector<2x8x8xf32>
    %38 = vector.extract_strided_slice %35 {offsets = [0, 8], sizes = [16, 8], strides = [1, 1]} : vector<16x32xf32> to vector<16x8xf32>
    %39 = vector.shape_cast %38 : vector<16x8xf32> to vector<2x8x8xf32>
    %40 = vector.extract_strided_slice %35 {offsets = [0, 16], sizes = [16, 8], strides = [1, 1]} : vector<16x32xf32> to vector<16x8xf32>
    %41 = vector.shape_cast %40 : vector<16x8xf32> to vector<2x8x8xf32>
    %42 = vector.extract_strided_slice %35 {offsets = [0, 24], sizes = [16, 8], strides = [1, 1]} : vector<16x32xf32> to vector<16x8xf32>
    %43 = vector.shape_cast %42 : vector<16x8xf32> to vector<2x8x8xf32>
    %44 = tpu.concatenate %37, %39, %41, %43 in 0 : vector<2x8x8xf32>, vector<2x8x8xf32>, vector<2x8x8xf32>, vector<2x8x8xf32> -> vector<8x8x8xf32>
    %45 = arith.truncf %44 : vector<8x8x8xf32> to vector<8x8x8xbf16>
    %46 = vector.extract_strided_slice %34 {offsets = [0, 32], sizes = [16, 32], strides = [1, 1]} : vector<16x96xf32> to vector<16x32xf32>
    %47 = vector.extract_strided_slice %46 {offsets = [0, 0], sizes = [16, 8], strides = [1, 1]} : vector<16x32xf32> to vector<16x8xf32>
    %48 = vector.shape_cast %47 : vector<16x8xf32> to vector<2x8x8xf32>
    %49 = vector.extract_strided_slice %46 {offsets = [0, 8], sizes = [16, 8], strides = [1, 1]} : vector<16x32xf32> to vector<16x8xf32>
    %50 = vector.shape_cast %49 : vector<16x8xf32> to vector<2x8x8xf32>
    %51 = vector.extract_strided_slice %46 {offsets = [0, 16], sizes = [16, 8], strides = [1, 1]} : vector<16x32xf32> to vector<16x8xf32>
    %52 = vector.shape_cast %51 : vector<16x8xf32> to vector<2x8x8xf32>
    %53 = vector.extract_strided_slice %46 {offsets = [0, 24], sizes = [16, 8], strides = [1, 1]} : vector<16x32xf32> to vector<16x8xf32>
    %54 = vector.shape_cast %53 : vector<16x8xf32> to vector<2x8x8xf32>
    %55 = tpu.concatenate %48, %50, %52, %54 in 0 : vector<2x8x8xf32>, vector<2x8x8xf32>, vector<2x8x8xf32>, vector<2x8x8xf32> -> vector<8x8x8xf32>
    %56 = arith.truncf %55 : vector<8x8x8xf32> to vector<8x8x8xbf16>
    %57 = vector.extract_strided_slice %34 {offsets = [0, 64], sizes = [16, 32], strides = [1, 1]} : vector<16x96xf32> to vector<16x32xf32>
    %58 = vector.extract_strided_slice %57 {offsets = [0, 0], sizes = [16, 8], strides = [1, 1]} : vector<16x32xf32> to vector<16x8xf32>
    %59 = vector.shape_cast %58 : vector<16x8xf32> to vector<2x8x8xf32>
    %60 = vector.extract_strided_slice %57 {offsets = [0, 8], sizes = [16, 8], strides = [1, 1]} : vector<16x32xf32> to vector<16x8xf32>
    %61 = vector.shape_cast %60 : vector<16x8xf32> to vector<2x8x8xf32>
    %62 = vector.extract_strided_slice %57 {offsets = [0, 16], sizes = [16, 8], strides = [1, 1]} : vector<16x32xf32> to vector<16x8xf32>
    %63 = vector.shape_cast %62 : vector<16x8xf32> to vector<2x8x8xf32>
    %64 = vector.extract_strided_slice %57 {offsets = [0, 24], sizes = [16, 8], strides = [1, 1]} : vector<16x32xf32> to vector<16x8xf32>
    %65 = vector.shape_cast %64 : vector<16x8xf32> to vector<2x8x8xf32>
    %66 = tpu.concatenate %59, %61, %63, %65 in 0 : vector<2x8x8xf32>, vector<2x8x8xf32>, vector<2x8x8xf32>, vector<2x8x8xf32> -> vector<8x8x8xf32>
    %67 = arith.truncf %66 : vector<8x8x8xf32> to vector<8x8x8xbf16>
    "tpu.trace_start"() <{level = 10 : i32, message = "bqd,bkd->bqk"}> : () -> ()
    %cst_18 = arith.constant dense<0.000000e+00> : vector<8x8x8xf32>
    %68 = tpu.matmul %45, %56, %cst_18 {dimension_numbers = #tpu.dot_dimension_numbers<[2], [2], [1], [1], [0, 0, 0, 1, 1, 1], [0], [0]>} : vector<8x8x8xbf16>, vector<8x8x8xbf16>, vector<8x8x8xf32> -> vector<8x8x8xf32>
    "tpu.trace_stop"() : () -> ()
    %cst_19 = arith.constant dense<0xFF800000> : vector<8x8xf32>
    %69 = vector.multi_reduction <maximumf>, %68, %cst_19 [2] : vector<8x8x8xf32> to vector<8x8xf32>
    %70 = vector.shape_cast %69 : vector<8x8xf32> to vector<8x8x1xf32>
    %71 = vector.broadcast %70 : vector<8x8x1xf32> to vector<8x8x8xf32>
    %72 = arith.subf %68, %71 : vector<8x8x8xf32>
    %73 = math.exp %72 : vector<8x8x8xf32>
    %cst_20 = arith.constant dense<0.000000e+00> : vector<8x8xf32>
    %74 = vector.multi_reduction <add>, %73, %cst_20 [2] : vector<8x8x8xf32> to vector<8x8xf32>
    %75 = vector.shape_cast %74 : vector<8x8xf32> to vector<8x8x1xf32>
    %76 = tpu.reciprocal %75 {approx = true} : vector<8x8x1xf32> -> vector<8x8x1xf32>
    %77 = vector.broadcast %76 : vector<8x8x1xf32> to vector<8x8x8xf32>
    %78 = arith.mulf %73, %77 : vector<8x8x8xf32>
    %79 = arith.truncf %78 : vector<8x8x8xf32> to vector<8x8x8xbf16>
    "tpu.trace_start"() <{level = 10 : i32, message = "bqk,bkd->bqd"}> : () -> ()
    %cst_21 = arith.constant dense<0.000000e+00> : vector<8x8x8xf32>
    %80 = tpu.matmul %79, %67, %cst_21 {dimension_numbers = #tpu.dot_dimension_numbers<[2], [1], [1], [2], [0, 0, 0, 1, 1, 2], [0], [0]>} : vector<8x8x8xbf16>, vector<8x8x8xbf16>, vector<8x8x8xf32> -> vector<8x8x8xf32>
    "tpu.trace_stop"() : () -> ()
    %81 = vector.extract_strided_slice %80 {offsets = [0, 0, 0], sizes = [2, 8, 8], strides = [1, 1, 1]} : vector<8x8x8xf32> to vector<2x8x8xf32>
    %82 = vector.shape_cast %81 : vector<2x8x8xf32> to vector<16x8xf32>
    %83 = vector.extract_strided_slice %80 {offsets = [2, 0, 0], sizes = [2, 8, 8], strides = [1, 1, 1]} : vector<8x8x8xf32> to vector<2x8x8xf32>
    %84 = vector.shape_cast %83 : vector<2x8x8xf32> to vector<16x8xf32>
    %85 = vector.extract_strided_slice %80 {offsets = [4, 0, 0], sizes = [2, 8, 8], strides = [1, 1, 1]} : vector<8x8x8xf32> to vector<2x8x8xf32>
    %86 = vector.shape_cast %85 : vector<2x8x8xf32> to vector<16x8xf32>
    %87 = vector.extract_strided_slice %80 {offsets = [6, 0, 0], sizes = [2, 8, 8], strides = [1, 1, 1]} : vector<8x8x8xf32> to vector<2x8x8xf32>
    %88 = vector.shape_cast %87 : vector<2x8x8xf32> to vector<16x8xf32>
    %89 = tpu.concatenate %82, %84, %86, %88 in 1 : vector<16x8xf32>, vector<16x8xf32>, vector<16x8xf32>, vector<16x8xf32> -> vector<16x32xf32>
    %c0_22 = arith.constant 0 : index
    %c0_23 = arith.constant 0 : index
    %c0_24 = arith.constant 0 : index
    %90 = vector.load %arg5[%c0_22, %c0_23, %c0_24] : memref<2x32x32xbf16, #tpu.memory_space<vmem>>, vector<1x32x32xbf16>
    %91 = vector.shape_cast %90 : vector<1x32x32xbf16> to vector<32x32xbf16>
    %92 = arith.truncf %89 : vector<16x32xf32> to vector<16x32xbf16>
    %cst_25 = arith.constant dense<0.000000e+00> : vector<16x32xf32>
    %93 = tpu.matmul %92, %91, %cst_25 {dimension_numbers = #tpu.dot_dimension_numbers<[1], [0], [0], [1], [0, 0, 1, 1], [], []>} : vector<16x32xbf16>, vector<32x32xbf16>, vector<16x32xf32> -> vector<16x32xf32>
    %94 = vector.extract_strided_slice %26 {offsets = [0, 0], sizes = [1, 32], strides = [1, 1]} : vector<6x32xf32> to vector<1x32xf32>
    %95 = vector.broadcast %94 : vector<1x32xf32> to vector<16x32xf32>
    %96 = arith.addf %93, %95 : vector<16x32xf32>
    %97 = arith.addf %96, %24 : vector<16x32xf32>
    %98 = vector.extract_strided_slice %26 {offsets = [1, 0], sizes = [1, 32], strides = [1, 1]} : vector<6x32xf32> to vector<1x32xf32>
    %99 = vector.extract_strided_slice %26 {offsets = [2, 0], sizes = [1, 32], strides = [1, 1]} : vector<6x32xf32> to vector<1x32xf32>
    %cst_26 = arith.constant dense<0.000000e+00> : vector<16xf32>
    %100 = vector.multi_reduction <add>, %97, %cst_26 [1] : vector<16x32xf32> to vector<16xf32>
    %101 = vector.shape_cast %100 : vector<16xf32> to vector<16x1xf32>
    %cst_27 = arith.constant 3.200000e+01 : f32
    %102 = vector.broadcast %cst_27 : f32 to vector<16x1xf32>
    %103 = arith.divf %101, %102 : vector<16x1xf32>
    %104 = vector.broadcast %103 : vector<16x1xf32> to vector<16x32xf32>
    %105 = arith.subf %97, %104 : vector<16x32xf32>
    %106 = arith.mulf %105, %105 : vector<16x32xf32>
    %cst_28 = arith.constant dense<0.000000e+00> : vector<16xf32>
    %107 = vector.multi_reduction <add>, %106, %cst_28 [1] : vector<16x32xf32> to vector<16xf32>
    %108 = vector.shape_cast %107 : vector<16xf32> to vector<16x1xf32>
    %cst_29 = arith.constant 3.200000e+01 : f32
    %109 = vector.broadcast %cst_29 : f32 to vector<16x1xf32>
    %110 = arith.divf %108, %109 : vector<16x1xf32>
    %111 = vector.broadcast %103 : vector<16x1xf32> to vector<16x32xf32>
    %112 = arith.subf %97, %111 : vector<16x32xf32>
    %cst_30 = arith.constant 9.99999974E-6 : f32
    %113 = vector.broadcast %cst_30 : f32 to vector<16x1xf32>
    %114 = arith.addf %110, %113 : vector<16x1xf32>
    %115 = math.rsqrt %114 : vector<16x1xf32>
    %116 = vector.broadcast %115 : vector<16x1xf32> to vector<16x32xf32>
    %117 = arith.mulf %112, %116 : vector<16x32xf32>
    %118 = vector.broadcast %98 : vector<1x32xf32> to vector<16x32xf32>
    %119 = arith.mulf %117, %118 : vector<16x32xf32>
    %120 = vector.broadcast %99 : vector<1x32xf32> to vector<16x32xf32>
    %121 = arith.addf %119, %120 : vector<16x32xf32>
    %c0_31 = arith.constant 0 : index
    %c0_32 = arith.constant 0 : index
    %c0_33 = arith.constant 0 : index
    %122 = vector.load %arg6[%c0_31, %c0_32, %c0_33] : memref<2x32x64xbf16, #tpu.memory_space<vmem>>, vector<1x32x64xbf16>
    %123 = vector.shape_cast %122 : vector<1x32x64xbf16> to vector<32x64xbf16>
    %124 = arith.truncf %121 : vector<16x32xf32> to vector<16x32xbf16>
    %cst_34 = arith.constant dense<0.000000e+00> : vector<16x64xf32>
    %125 = tpu.matmul %124, %123, %cst_34 {dimension_numbers = #tpu.dot_dimension_numbers<[1], [0], [0], [1], [0, 0, 1, 1], [], []>} : vector<16x32xbf16>, vector<32x64xbf16>, vector<16x64xf32> -> vector<16x64xf32>
    %c0_35 = arith.constant 0 : index
    %c0_36 = arith.constant 0 : index
    %c0_37 = arith.constant 0 : index
    %126 = vector.load %arg7[%c0_35, %c0_36, %c0_37] : memref<2x1x64xf32, #tpu.memory_space<vmem>>, vector<1x1x64xf32>
    %127 = vector.shape_cast %126 : vector<1x1x64xf32> to vector<1x64xf32>
    %128 = vector.broadcast %127 : vector<1x64xf32> to vector<16x64xf32>
    %129 = arith.addf %125, %128 : vector<16x64xf32>
    %cst_38 = arith.constant 5.000000e-01 : f32
    %130 = vector.broadcast %cst_38 : f32 to vector<16x64xf32>
    %131 = arith.mulf %130, %129 : vector<16x64xf32>
    %cst_39 = arith.constant 0.707106769 : f32
    %132 = vector.broadcast %cst_39 : f32 to vector<16x64xf32>
    %133 = arith.mulf %129, %132 : vector<16x64xf32>
    %134 = math.erf %133 : vector<16x64xf32>
    %cst_40 = arith.constant 1.000000e+00 : f32
    %135 = vector.broadcast %cst_40 : f32 to vector<16x64xf32>
    %136 = arith.addf %135, %134 : vector<16x64xf32>
    %137 = arith.mulf %131, %136 : vector<16x64xf32>
    %c0_41 = arith.constant 0 : index
    %c0_42 = arith.constant 0 : index
    %c0_43 = arith.constant 0 : index
    %138 = vector.load %arg8[%c0_41, %c0_42, %c0_43] : memref<2x64x32xbf16, #tpu.memory_space<vmem>>, vector<1x64x32xbf16>
    %139 = vector.shape_cast %138 : vector<1x64x32xbf16> to vector<64x32xbf16>
    %140 = arith.truncf %137 : vector<16x64xf32> to vector<16x64xbf16>
    %cst_44 = arith.constant dense<0.000000e+00> : vector<16x32xf32>
    %141 = tpu.matmul %140, %139, %cst_44 {dimension_numbers = #tpu.dot_dimension_numbers<[1], [0], [0], [1], [0, 0, 1, 1], [], []>} : vector<16x64xbf16>, vector<64x32xbf16>, vector<16x32xf32> -> vector<16x32xf32>
    %142 = vector.extract_strided_slice %26 {offsets = [3, 0], sizes = [1, 32], strides = [1, 1]} : vector<6x32xf32> to vector<1x32xf32>
    %143 = vector.broadcast %142 : vector<1x32xf32> to vector<16x32xf32>
    %144 = arith.addf %141, %143 : vector<16x32xf32>
    %145 = arith.addf %144, %121 : vector<16x32xf32>
    %146 = vector.extract_strided_slice %26 {offsets = [4, 0], sizes = [1, 32], strides = [1, 1]} : vector<6x32xf32> to vector<1x32xf32>
    %147 = vector.extract_strided_slice %26 {offsets = [5, 0], sizes = [1, 32], strides = [1, 1]} : vector<6x32xf32> to vector<1x32xf32>
    %cst_45 = arith.constant dense<0.000000e+00> : vector<16xf32>
    %148 = vector.multi_reduction <add>, %145, %cst_45 [1] : vector<16x32xf32> to vector<16xf32>
    %149 = vector.shape_cast %148 : vector<16xf32> to vector<16x1xf32>
    %cst_46 = arith.constant 3.200000e+01 : f32
    %150 = vector.broadcast %cst_46 : f32 to vector<16x1xf32>
    %151 = arith.divf %149, %150 : vector<16x1xf32>
    %152 = vector.broadcast %151 : vector<16x1xf32> to vector<16x32xf32>
    %153 = arith.subf %145, %152 : vector<16x32xf32>
    %154 = arith.mulf %153, %153 : vector<16x32xf32>
    %cst_47 = arith.constant dense<0.000000e+00> : vector<16xf32>
    %155 = vector.multi_reduction <add>, %154, %cst_47 [1] : vector<16x32xf32> to vector<16xf32>
    %156 = vector.shape_cast %155 : vector<16xf32> to vector<16x1xf32>
    %cst_48 = arith.constant 3.200000e+01 : f32
    %157 = vector.broadcast %cst_48 : f32 to vector<16x1xf32>
    %158 = arith.divf %156, %157 : vector<16x1xf32>
    %159 = vector.broadcast %151 : vector<16x1xf32> to vector<16x32xf32>
    %160 = arith.subf %145, %159 : vector<16x32xf32>
    %cst_49 = arith.constant 9.99999974E-6 : f32
    %161 = vector.broadcast %cst_49 : f32 to vector<16x1xf32>
    %162 = arith.addf %158, %161 : vector<16x1xf32>
    %163 = math.rsqrt %162 : vector<16x1xf32>
    %164 = vector.broadcast %163 : vector<16x1xf32> to vector<16x32xf32>
    %165 = arith.mulf %160, %164 : vector<16x32xf32>
    %166 = vector.broadcast %146 : vector<1x32xf32> to vector<16x32xf32>
    %167 = arith.mulf %165, %166 : vector<16x32xf32>
    %168 = vector.broadcast %147 : vector<1x32xf32> to vector<16x32xf32>
    %169 = arith.addf %167, %168 : vector<16x32xf32>
    %c1_50 = arith.constant 1 : index
    %c0_51 = arith.constant 0 : index
    %c0_52 = arith.constant 0 : index
    %170 = vector.load %arg9[%c1_50, %c0_51, %c0_52] : memref<2x6x32xf32, #tpu.memory_space<vmem>>, vector<1x6x32xf32>
    %171 = vector.shape_cast %170 : vector<1x6x32xf32> to vector<6x32xf32>
    %c1_53 = arith.constant 1 : index
    %c0_54 = arith.constant 0 : index
    %c0_55 = arith.constant 0 : index
    %172 = vector.load %arg3[%c1_53, %c0_54, %c0_55] : memref<2x32x96xbf16, #tpu.memory_space<vmem>>, vector<1x32x96xbf16>
    %173 = vector.shape_cast %172 : vector<1x32x96xbf16> to vector<32x96xbf16>
    %174 = arith.truncf %169 : vector<16x32xf32> to vector<16x32xbf16>
    %cst_56 = arith.constant dense<0.000000e+00> : vector<16x96xf32>
    %175 = tpu.matmul %174, %173, %cst_56 {dimension_numbers = #tpu.dot_dimension_numbers<[1], [0], [0], [1], [0, 0, 1, 1], [], []>} : vector<16x32xbf16>, vector<32x96xbf16>, vector<16x96xf32> -> vector<16x96xf32>
    %c1_57 = arith.constant 1 : index
    %c0_58 = arith.constant 0 : index
    %c0_59 = arith.constant 0 : index
    %176 = vector.load %arg4[%c1_57, %c0_58, %c0_59] : memref<2x1x96xf32, #tpu.memory_space<vmem>>, vector<1x1x96xf32>
    %177 = vector.shape_cast %176 : vector<1x1x96xf32> to vector<1x96xf32>
    %178 = vector.broadcast %177 : vector<1x96xf32> to vector<16x96xf32>
    %179 = arith.addf %175, %178 : vector<16x96xf32>
    %180 = vector.extract_strided_slice %179 {offsets = [0, 0], sizes = [16, 32], strides = [1, 1]} : vector<16x96xf32> to vector<16x32xf32>
    %181 = vector.extract_strided_slice %180 {offsets = [0, 0], sizes = [16, 8], strides = [1, 1]} : vector<16x32xf32> to vector<16x8xf32>
    %182 = vector.shape_cast %181 : vector<16x8xf32> to vector<2x8x8xf32>
    %183 = vector.extract_strided_slice %180 {offsets = [0, 8], sizes = [16, 8], strides = [1, 1]} : vector<16x32xf32> to vector<16x8xf32>
    %184 = vector.shape_cast %183 : vector<16x8xf32> to vector<2x8x8xf32>
    %185 = vector.extract_strided_slice %180 {offsets = [0, 16], sizes = [16, 8], strides = [1, 1]} : vector<16x32xf32> to vector<16x8xf32>
    %186 = vector.shape_cast %185 : vector<16x8xf32> to vector<2x8x8xf32>
    %187 = vector.extract_strided_slice %180 {offsets = [0, 24], sizes = [16, 8], strides = [1, 1]} : vector<16x32xf32> to vector<16x8xf32>
    %188 = vector.shape_cast %187 : vector<16x8xf32> to vector<2x8x8xf32>
    %189 = tpu.concatenate %182, %184, %186, %188 in 0 : vector<2x8x8xf32>, vector<2x8x8xf32>, vector<2x8x8xf32>, vector<2x8x8xf32> -> vector<8x8x8xf32>
    %190 = arith.truncf %189 : vector<8x8x8xf32> to vector<8x8x8xbf16>
    %191 = vector.extract_strided_slice %179 {offsets = [0, 32], sizes = [16, 32], strides = [1, 1]} : vector<16x96xf32> to vector<16x32xf32>
    %192 = vector.extract_strided_slice %191 {offsets = [0, 0], sizes = [16, 8], strides = [1, 1]} : vector<16x32xf32> to vector<16x8xf32>
    %193 = vector.shape_cast %192 : vector<16x8xf32> to vector<2x8x8xf32>
    %194 = vector.extract_strided_slice %191 {offsets = [0, 8], sizes = [16, 8], strides = [1, 1]} : vector<16x32xf32> to vector<16x8xf32>
    %195 = vector.shape_cast %194 : vector<16x8xf32> to vector<2x8x8xf32>
    %196 = vector.extract_strided_slice %191 {offsets = [0, 16], sizes = [16, 8], strides = [1, 1]} : vector<16x32xf32> to vector<16x8xf32>
    %197 = vector.shape_cast %196 : vector<16x8xf32> to vector<2x8x8xf32>
    %198 = vector.extract_strided_slice %191 {offsets = [0, 24], sizes = [16, 8], strides = [1, 1]} : vector<16x32xf32> to vector<16x8xf32>
    %199 = vector.shape_cast %198 : vector<16x8xf32> to vector<2x8x8xf32>
    %200 = tpu.concatenate %193, %195, %197, %199 in 0 : vector<2x8x8xf32>, vector<2x8x8xf32>, vector<2x8x8xf32>, vector<2x8x8xf32> -> vector<8x8x8xf32>
    %201 = arith.truncf %200 : vector<8x8x8xf32> to vector<8x8x8xbf16>
    %202 = vector.extract_strided_slice %179 {offsets = [0, 64], sizes = [16, 32], strides = [1, 1]} : vector<16x96xf32> to vector<16x32xf32>
    %203 = vector.extract_strided_slice %202 {offsets = [0, 0], sizes = [16, 8], strides = [1, 1]} : vector<16x32xf32> to vector<16x8xf32>
    %204 = vector.shape_cast %203 : vector<16x8xf32> to vector<2x8x8xf32>
    %205 = vector.extract_strided_slice %202 {offsets = [0, 8], sizes = [16, 8], strides = [1, 1]} : vector<16x32xf32> to vector<16x8xf32>
    %206 = vector.shape_cast %205 : vector<16x8xf32> to vector<2x8x8xf32>
    %207 = vector.extract_strided_slice %202 {offsets = [0, 16], sizes = [16, 8], strides = [1, 1]} : vector<16x32xf32> to vector<16x8xf32>
    %208 = vector.shape_cast %207 : vector<16x8xf32> to vector<2x8x8xf32>
    %209 = vector.extract_strided_slice %202 {offsets = [0, 24], sizes = [16, 8], strides = [1, 1]} : vector<16x32xf32> to vector<16x8xf32>
    %210 = vector.shape_cast %209 : vector<16x8xf32> to vector<2x8x8xf32>
    %211 = tpu.concatenate %204, %206, %208, %210 in 0 : vector<2x8x8xf32>, vector<2x8x8xf32>, vector<2x8x8xf32>, vector<2x8x8xf32> -> vector<8x8x8xf32>
    %212 = arith.truncf %211 : vector<8x8x8xf32> to vector<8x8x8xbf16>
    "tpu.trace_start"() <{level = 10 : i32, message = "bqd,bkd->bqk"}> : () -> ()
    %cst_60 = arith.constant dense<0.000000e+00> : vector<8x8x8xf32>
    %213 = tpu.matmul %190, %201, %cst_60 {dimension_numbers = #tpu.dot_dimension_numbers<[2], [2], [1], [1], [0, 0, 0, 1, 1, 1], [0], [0]>} : vector<8x8x8xbf16>, vector<8x8x8xbf16>, vector<8x8x8xf32> -> vector<8x8x8xf32>
    "tpu.trace_stop"() : () -> ()
    %cst_61 = arith.constant dense<0xFF800000> : vector<8x8xf32>
    %214 = vector.multi_reduction <maximumf>, %213, %cst_61 [2] : vector<8x8x8xf32> to vector<8x8xf32>
    %215 = vector.shape_cast %214 : vector<8x8xf32> to vector<8x8x1xf32>
    %216 = vector.broadcast %215 : vector<8x8x1xf32> to vector<8x8x8xf32>
    %217 = arith.subf %213, %216 : vector<8x8x8xf32>
    %218 = math.exp %217 : vector<8x8x8xf32>
    %cst_62 = arith.constant dense<0.000000e+00> : vector<8x8xf32>
    %219 = vector.multi_reduction <add>, %218, %cst_62 [2] : vector<8x8x8xf32> to vector<8x8xf32>
    %220 = vector.shape_cast %219 : vector<8x8xf32> to vector<8x8x1xf32>
    %221 = tpu.reciprocal %220 {approx = true} : vector<8x8x1xf32> -> vector<8x8x1xf32>
    %222 = vector.broadcast %221 : vector<8x8x1xf32> to vector<8x8x8xf32>
    %223 = arith.mulf %218, %222 : vector<8x8x8xf32>
    %224 = arith.truncf %223 : vector<8x8x8xf32> to vector<8x8x8xbf16>
    "tpu.trace_start"() <{level = 10 : i32, message = "bqk,bkd->bqd"}> : () -> ()
    %cst_63 = arith.constant dense<0.000000e+00> : vector<8x8x8xf32>
    %225 = tpu.matmul %224, %212, %cst_63 {dimension_numbers = #tpu.dot_dimension_numbers<[2], [1], [1], [2], [0, 0, 0, 1, 1, 2], [0], [0]>} : vector<8x8x8xbf16>, vector<8x8x8xbf16>, vector<8x8x8xf32> -> vector<8x8x8xf32>
    "tpu.trace_stop"() : () -> ()
    %226 = vector.extract_strided_slice %225 {offsets = [0, 0, 0], sizes = [2, 8, 8], strides = [1, 1, 1]} : vector<8x8x8xf32> to vector<2x8x8xf32>
    %227 = vector.shape_cast %226 : vector<2x8x8xf32> to vector<16x8xf32>
    %228 = vector.extract_strided_slice %225 {offsets = [2, 0, 0], sizes = [2, 8, 8], strides = [1, 1, 1]} : vector<8x8x8xf32> to vector<2x8x8xf32>
    %229 = vector.shape_cast %228 : vector<2x8x8xf32> to vector<16x8xf32>
    %230 = vector.extract_strided_slice %225 {offsets = [4, 0, 0], sizes = [2, 8, 8], strides = [1, 1, 1]} : vector<8x8x8xf32> to vector<2x8x8xf32>
    %231 = vector.shape_cast %230 : vector<2x8x8xf32> to vector<16x8xf32>
    %232 = vector.extract_strided_slice %225 {offsets = [6, 0, 0], sizes = [2, 8, 8], strides = [1, 1, 1]} : vector<8x8x8xf32> to vector<2x8x8xf32>
    %233 = vector.shape_cast %232 : vector<2x8x8xf32> to vector<16x8xf32>
    %234 = tpu.concatenate %227, %229, %231, %233 in 1 : vector<16x8xf32>, vector<16x8xf32>, vector<16x8xf32>, vector<16x8xf32> -> vector<16x32xf32>
    %c1_64 = arith.constant 1 : index
    %c0_65 = arith.constant 0 : index
    %c0_66 = arith.constant 0 : index
    %235 = vector.load %arg5[%c1_64, %c0_65, %c0_66] : memref<2x32x32xbf16, #tpu.memory_space<vmem>>, vector<1x32x32xbf16>
    %236 = vector.shape_cast %235 : vector<1x32x32xbf16> to vector<32x32xbf16>
    %237 = arith.truncf %234 : vector<16x32xf32> to vector<16x32xbf16>
    %cst_67 = arith.constant dense<0.000000e+00> : vector<16x32xf32>
    %238 = tpu.matmul %237, %236, %cst_67 {dimension_numbers = #tpu.dot_dimension_numbers<[1], [0], [0], [1], [0, 0, 1, 1], [], []>} : vector<16x32xbf16>, vector<32x32xbf16>, vector<16x32xf32> -> vector<16x32xf32>
    %239 = vector.extract_strided_slice %171 {offsets = [0, 0], sizes = [1, 32], strides = [1, 1]} : vector<6x32xf32> to vector<1x32xf32>
    %240 = vector.broadcast %239 : vector<1x32xf32> to vector<16x32xf32>
    %241 = arith.addf %238, %240 : vector<16x32xf32>
    %242 = arith.addf %241, %169 : vector<16x32xf32>
    %243 = vector.extract_strided_slice %171 {offsets = [1, 0], sizes = [1, 32], strides = [1, 1]} : vector<6x32xf32> to vector<1x32xf32>
    %244 = vector.extract_strided_slice %171 {offsets = [2, 0], sizes = [1, 32], strides = [1, 1]} : vector<6x32xf32> to vector<1x32xf32>
    %cst_68 = arith.constant dense<0.000000e+00> : vector<16xf32>
    %245 = vector.multi_reduction <add>, %242, %cst_68 [1] : vector<16x32xf32> to vector<16xf32>
    %246 = vector.shape_cast %245 : vector<16xf32> to vector<16x1xf32>
    %cst_69 = arith.constant 3.200000e+01 : f32
    %247 = vector.broadcast %cst_69 : f32 to vector<16x1xf32>
    %248 = arith.divf %246, %247 : vector<16x1xf32>
    %249 = vector.broadcast %248 : vector<16x1xf32> to vector<16x32xf32>
    %250 = arith.subf %242, %249 : vector<16x32xf32>
    %251 = arith.mulf %250, %250 : vector<16x32xf32>
    %cst_70 = arith.constant dense<0.000000e+00> : vector<16xf32>
    %252 = vector.multi_reduction <add>, %251, %cst_70 [1] : vector<16x32xf32> to vector<16xf32>
    %253 = vector.shape_cast %252 : vector<16xf32> to vector<16x1xf32>
    %cst_71 = arith.constant 3.200000e+01 : f32
    %254 = vector.broadcast %cst_71 : f32 to vector<16x1xf32>
    %255 = arith.divf %253, %254 : vector<16x1xf32>
    %256 = vector.broadcast %248 : vector<16x1xf32> to vector<16x32xf32>
    %257 = arith.subf %242, %256 : vector<16x32xf32>
    %cst_72 = arith.constant 9.99999974E-6 : f32
    %258 = vector.broadcast %cst_72 : f32 to vector<16x1xf32>
    %259 = arith.addf %255, %258 : vector<16x1xf32>
    %260 = math.rsqrt %259 : vector<16x1xf32>
    %261 = vector.broadcast %260 : vector<16x1xf32> to vector<16x32xf32>
    %262 = arith.mulf %257, %261 : vector<16x32xf32>
    %263 = vector.broadcast %243 : vector<1x32xf32> to vector<16x32xf32>
    %264 = arith.mulf %262, %263 : vector<16x32xf32>
    %265 = vector.broadcast %244 : vector<1x32xf32> to vector<16x32xf32>
    %266 = arith.addf %264, %265 : vector<16x32xf32>
    %c1_73 = arith.constant 1 : index
    %c0_74 = arith.constant 0 : index
    %c0_75 = arith.constant 0 : index
    %267 = vector.load %arg6[%c1_73, %c0_74, %c0_75] : memref<2x32x64xbf16, #tpu.memory_space<vmem>>, vector<1x32x64xbf16>
    %268 = vector.shape_cast %267 : vector<1x32x64xbf16> to vector<32x64xbf16>
    %269 = arith.truncf %266 : vector<16x32xf32> to vector<16x32xbf16>
    %cst_76 = arith.constant dense<0.000000e+00> : vector<16x64xf32>
    %270 = tpu.matmul %269, %268, %cst_76 {dimension_numbers = #tpu.dot_dimension_numbers<[1], [0], [0], [1], [0, 0, 1, 1], [], []>} : vector<16x32xbf16>, vector<32x64xbf16>, vector<16x64xf32> -> vector<16x64xf32>
    %c1_77 = arith.constant 1 : index
    %c0_78 = arith.constant 0 : index
    %c0_79 = arith.constant 0 : index
    %271 = vector.load %arg7[%c1_77, %c0_78, %c0_79] : memref<2x1x64xf32, #tpu.memory_space<vmem>>, vector<1x1x64xf32>
    %272 = vector.shape_cast %271 : vector<1x1x64xf32> to vector<1x64xf32>
    %273 = vector.broadcast %272 : vector<1x64xf32> to vector<16x64xf32>
    %274 = arith.addf %270, %273 : vector<16x64xf32>
    %cst_80 = arith.constant 5.000000e-01 : f32
    %275 = vector.broadcast %cst_80 : f32 to vector<16x64xf32>
    %276 = arith.mulf %275, %274 : vector<16x64xf32>
    %cst_81 = arith.constant 0.707106769 : f32
    %277 = vector.broadcast %cst_81 : f32 to vector<16x64xf32>
    %278 = arith.mulf %274, %277 : vector<16x64xf32>
    %279 = math.erf %278 : vector<16x64xf32>
    %cst_82 = arith.constant 1.000000e+00 : f32
    %280 = vector.broadcast %cst_82 : f32 to vector<16x64xf32>
    %281 = arith.addf %280, %279 : vector<16x64xf32>
    %282 = arith.mulf %276, %281 : vector<16x64xf32>
    %c1_83 = arith.constant 1 : index
    %c0_84 = arith.constant 0 : index
    %c0_85 = arith.constant 0 : index
    %283 = vector.load %arg8[%c1_83, %c0_84, %c0_85] : memref<2x64x32xbf16, #tpu.memory_space<vmem>>, vector<1x64x32xbf16>
    %284 = vector.shape_cast %283 : vector<1x64x32xbf16> to vector<64x32xbf16>
    %285 = arith.truncf %282 : vector<16x64xf32> to vector<16x64xbf16>
    %cst_86 = arith.constant dense<0.000000e+00> : vector<16x32xf32>
    %286 = tpu.matmul %285, %284, %cst_86 {dimension_numbers = #tpu.dot_dimension_numbers<[1], [0], [0], [1], [0, 0, 1, 1], [], []>} : vector<16x64xbf16>, vector<64x32xbf16>, vector<16x32xf32> -> vector<16x32xf32>
    %287 = vector.extract_strided_slice %171 {offsets = [3, 0], sizes = [1, 32], strides = [1, 1]} : vector<6x32xf32> to vector<1x32xf32>
    %288 = vector.broadcast %287 : vector<1x32xf32> to vector<16x32xf32>
    %289 = arith.addf %286, %288 : vector<16x32xf32>
    %290 = arith.addf %289, %266 : vector<16x32xf32>
    %291 = vector.extract_strided_slice %171 {offsets = [4, 0], sizes = [1, 32], strides = [1, 1]} : vector<6x32xf32> to vector<1x32xf32>
    %292 = vector.extract_strided_slice %171 {offsets = [5, 0], sizes = [1, 32], strides = [1, 1]} : vector<6x32xf32> to vector<1x32xf32>
    %cst_87 = arith.constant dense<0.000000e+00> : vector<16xf32>
    %293 = vector.multi_reduction <add>, %290, %cst_87 [1] : vector<16x32xf32> to vector<16xf32>
    %294 = vector.shape_cast %293 : vector<16xf32> to vector<16x1xf32>
    %cst_88 = arith.constant 3.200000e+01 : f32
    %295 = vector.broadcast %cst_88 : f32 to vector<16x1xf32>
    %296 = arith.divf %294, %295 : vector<16x1xf32>
    %297 = vector.broadcast %296 : vector<16x1xf32> to vector<16x32xf32>
    %298 = arith.subf %290, %297 : vector<16x32xf32>
    %299 = arith.mulf %298, %298 : vector<16x32xf32>
    %cst_89 = arith.constant dense<0.000000e+00> : vector<16xf32>
    %300 = vector.multi_reduction <add>, %299, %cst_89 [1] : vector<16x32xf32> to vector<16xf32>
    %301 = vector.shape_cast %300 : vector<16xf32> to vector<16x1xf32>
    %cst_90 = arith.constant 3.200000e+01 : f32
    %302 = vector.broadcast %cst_90 : f32 to vector<16x1xf32>
    %303 = arith.divf %301, %302 : vector<16x1xf32>
    %304 = vector.broadcast %296 : vector<16x1xf32> to vector<16x32xf32>
    %305 = arith.subf %290, %304 : vector<16x32xf32>
    %cst_91 = arith.constant 9.99999974E-6 : f32
    %306 = vector.broadcast %cst_91 : f32 to vector<16x1xf32>
    %307 = arith.addf %303, %306 : vector<16x1xf32>
    %308 = math.rsqrt %307 : vector<16x1xf32>
    %309 = vector.broadcast %308 : vector<16x1xf32> to vector<16x32xf32>
    %310 = arith.mulf %305, %309 : vector<16x32xf32>
    %311 = vector.broadcast %291 : vector<1x32xf32> to vector<16x32xf32>
    %312 = arith.mulf %310, %311 : vector<16x32xf32>
    %313 = vector.broadcast %292 : vector<1x32xf32> to vector<16x32xf32>
    %314 = arith.addf %312, %313 : vector<16x32xf32>
    %315 = vector.extract_strided_slice %314 {offsets = [0, 0], sizes = [1, 32], strides = [1, 1]} : vector<16x32xf32> to vector<1x32xf32>
    %316 = vector.extract_strided_slice %314 {offsets = [8, 0], sizes = [1, 32], strides = [1, 1]} : vector<16x32xf32> to vector<1x32xf32>
    %317 = tpu.concatenate %315, %316 in 0 : vector<1x32xf32>, vector<1x32xf32> -> vector<2x32xf32>
    %c0_92 = arith.constant 0 : index
    %c0_93 = arith.constant 0 : index
    %318 = vector.load %arg10[%c0_92, %c0_93] : memref<32x32xbf16, #tpu.memory_space<vmem>>, vector<32x32xbf16>
    %319 = arith.truncf %317 : vector<2x32xf32> to vector<2x32xbf16>
    %cst_94 = arith.constant dense<0.000000e+00> : vector<2x32xf32>
    %320 = tpu.matmul %319, %318, %cst_94 {dimension_numbers = #tpu.dot_dimension_numbers<[1], [0], [0], [1], [0, 0, 1, 1], [], []>} : vector<2x32xbf16>, vector<32x32xbf16>, vector<2x32xf32> -> vector<2x32xf32>
    %c0_95 = arith.constant 0 : index
    %c0_96 = arith.constant 0 : index
    %321 = vector.load %arg11[%c0_95, %c0_96] : memref<1x32xf32, #tpu.memory_space<vmem>>, vector<1x32xf32>
    %322 = vector.broadcast %321 : vector<1x32xf32> to vector<2x32xf32>
    %323 = arith.addf %320, %322 : vector<2x32xf32>
    %324 = math.tanh %323 : vector<2x32xf32>
    %c0_97 = arith.constant 0 : index
    %c0_98 = arith.constant 0 : index
    %325 = vector.load %arg12[%c0_97, %c0_98] : memref<32x128xbf16, #tpu.memory_space<vmem>>, vector<32x128xbf16>
    %326 = arith.truncf %324 : vector<2x32xf32> to vector<2x32xbf16>
    %cst_99 = arith.constant dense<0.000000e+00> : vector<2x128xf32>
    %327 = tpu.matmul %326, %325, %cst_99 {dimension_numbers = #tpu.dot_dimension_numbers<[1], [0], [0], [1], [0, 0, 1, 1], [], []>} : vector<2x32xbf16>, vector<32x128xbf16>, vector<2x128xf32> -> vector<2x128xf32>
    %c0_100 = arith.constant 0 : index
    %c0_101 = arith.constant 0 : index
    %328 = vector.load %arg13[%c0_100, %c0_101] : memref<1x128xf32, #tpu.memory_space<vmem>>, vector<1x128xf32>
    %329 = vector.broadcast %328 : vector<1x128xf32> to vector<2x128xf32>
    %330 = arith.addf %327, %329 : vector<2x128xf32>
    %cst_102 = arith.constant dense<0xFF800000> : vector<2xf32>
    %331 = vector.multi_reduction <maximumf>, %330, %cst_102 [1] : vector<2x128xf32> to vector<2xf32>
    %332 = vector.shape_cast %331 : vector<2xf32> to vector<2x1xf32>
    %333 = vector.broadcast %332 : vector<2x1xf32> to vector<2x128xf32>
    %334 = arith.subf %330, %333 : vector<2x128xf32>
    %335 = math.exp %334 : vector<2x128xf32>
    %cst_103 = arith.constant dense<0.000000e+00> : vector<2xf32>
    %336 = vector.multi_reduction <add>, %335, %cst_103 [1] : vector<2x128xf32> to vector<2xf32>
    %337 = vector.shape_cast %336 : vector<2xf32> to vector<2x1xf32>
    %338 = vector.broadcast %337 : vector<2x1xf32> to vector<2x128xf32>
    %339 = arith.divf %335, %338 : vector<2x128xf32>
    %c0_104 = arith.constant 0 : index
    %c0_105 = arith.constant 0 : index
    %340 = vector.load %arg14[%c0_104, %c0_105] : memref<2x128xf32, #tpu.memory_space<vmem>>, vector<2x128xf32>
    tpu.vector_store %arg14[%c0_104, %c0_105], %339 {strides = array<i32>} : memref<2x128xf32, #tpu.memory_space<vmem>>, vector<2x128xf32>,
    return
  }
  func.func @transform_0(%arg0: i32) -> (i32, i32) {
    %c0_i32 = arith.constant 0 : i32
    %c0_i32_0 = arith.constant 0 : i32
    %c0_i32_1 = arith.constant 0 : i32
    return %c0_i32, %c0_i32_0 : i32, i32
  }
  func.func @transform_1(%arg0: i32) -> (i32, i32) {
    %c0_i32 = arith.constant 0 : i32
    %c0_i32_0 = arith.constant 0 : i32
    %c0_i32_1 = arith.constant 0 : i32
    return %c0_i32, %c0_i32_0 : i32, i32
  }
  func.func @transform_2(%arg0: i32) -> (i32, i32, i32) {
    %c0_i32 = arith.constant 0 : i32
    %c0_i32_0 = arith.constant 0 : i32
    %c0_i32_1 = arith.constant 0 : i32
    %c0_i32_2 = arith.constant 0 : i32
    return %c0_i32, %c0_i32_0, %c0_i32_1 : i32, i32, i32
  }
  func.func @transform_3(%arg0: i32) -> (i32, i32, i32) {
    %c0_i32 = arith.constant 0 : i32
    %c0_i32_0 = arith.constant 0 : i32
    %c0_i32_1 = arith.constant 0 : i32
    %c0_i32_2 = arith.constant 0 : i32
    return %c0_i32, %c0_i32_0, %c0_i32_1 : i32, i32, i32
  }
  func.func @transform_4(%arg0: i32) -> (i32, i32, i32) {
    %c0_i32 = arith.constant 0 : i32
    %c0_i32_0 = arith.constant 0 : i32
    %c0_i32_1 = arith.constant 0 : i32
    %c0_i32_2 = arith.constant 0 : i32
    return %c0_i32, %c0_i32_0, %c0_i32_1 : i32, i32, i32
  }
  func.func @transform_5(%arg0: i32) -> (i32, i32, i32) {
    %c0_i32 = arith.constant 0 : i32
    %c0_i32_0 = arith.constant 0 : i32
    %c0_i32_1 = arith.constant 0 : i32
    %c0_i32_2 = arith.constant 0 : i32
    return %c0_i32, %c0_i32_0, %c0_i32_1 : i32, i32, i32
  }
  func.func @transform_6(%arg0: i32) -> (i32, i32, i32) {
    %c0_i32 = arith.constant 0 : i32
    %c0_i32_0 = arith.constant 0 : i32
    %c0_i32_1 = arith.constant 0 : i32
    %c0_i32_2 = arith.constant 0 : i32
    return %c0_i32, %c0_i32_0, %c0_i32_1 : i32, i32, i32
  }
  func.func @transform_7(%arg0: i32) -> (i32, i32, i32) {
    %c0_i32 = arith.constant 0 : i32
    %c0_i32_0 = arith.constant 0 : i32
    %c0_i32_1 = arith.constant 0 : i32
    %c0_i32_2 = arith.constant 0 : i32
    return %c0_i32, %c0_i32_0, %c0_i32_1 : i32, i32, i32
  }
  func.func @transform_8(%arg0: i32) -> (i32, i32, i32) {
    %c0_i32 = arith.constant 0 : i32
    %c0_i32_0 = arith.constant 0 : i32
    %c0_i32_1 = arith.constant 0 : i32
    %c0_i32_2 = arith.constant 0 : i32
    return %c0_i32, %c0_i32_0, %c0_i32_1 : i32, i32, i32
  }
  func.func @transform_9(%arg0: i32) -> (i32, i32) {
    %c0_i32 = arith.constant 0 : i32
    %c0_i32_0 = arith.constant 0 : i32
    %c0_i32_1 = arith.constant 0 : i32
    return %c0_i32, %c0_i32_0 : i32, i32
  }
  func.func @transform_10(%arg0: i32) -> (i32, i32) {
    %c0_i32 = arith.constant 0 : i32
    %c0_i32_0 = arith.constant 0 : i32
    %c0_i32_1 = arith.constant 0 : i32
    return %c0_i32, %c0_i32_0 : i32, i32
  }
  func.func @transform_11(%arg0: i32) -> (i32, i32) {
    %c0_i32 = arith.constant 0 : i32
    %c0_i32_0 = arith.constant 0 : i32
    %c0_i32_1 = arith.constant 0 : i32
    return %c0_i32, %c0_i32_0 : i32, i32
  }
  func.func @transform_12(%arg0: i32) -> (i32, i32) {
    %c0_i32 = arith.constant 0 : i32
    %c0_i32_0 = arith.constant 0 : i32
    %c0_i32_1 = arith.constant 0 : i32
    return %c0_i32, %c0_i32_0 : i32, i32
  }
  func.func @transform_13(%arg0: i32) -> (i32, i32) {
    %c0_i32 = arith.constant 0 : i32
    %c0_i32_0 = arith.constant 0 : i32
    %c0_i32_1 = arith.constant 0 : i32
    return %c0_i32, %c0_i32_0 : i32, i32
  }
}

</mosaic_0001>

<bundles_post_ra>
// kernel: transformer_forward.1
= control target key start
LH: loop header
LB: loop body
LE: loop exit
PB: predicated region body
PF: predicated region fallthrough
CT: control target
= control target key end

     0   :  { %vm50_vm0 = vcmask 261120   ;;  %s2908_s0 = inlined_call_operand.vmem [shape: f32[16,32], index: 0, kind: input, shape index: {}]   ;;  %s2909_s1 = inlined_call_operand.vmem [shape: f32[2,32], index: 1, kind: input, shape index: {}]   ;;  %s2910_s2 = inlined_call_operand.vmem [shape: bf16[2,32,96], index: 2, kind: input, shape index: {}]   ;;  %s2911_s3 = inlined_call_operand.vmem [shape: f32[2,1,96], index: 3, kind: input, shape index: {}]   ;;  %s2912_s4 = inlined_call_operand.vmem [shape: bf16[2,32,32], index: 4, kind: input, shape index: {}]   ;;  %s2913_s5 = inlined_call_operand.vmem [shape: bf16[2,32,64], index: 5, kind: input, shape index: {}]   ;;  %s2914_s6 = inlined_call_operand.vmem [shape: f32[2,1,64], index: 6, kind: input, shape index: {}]   ;;  %s2915_s7 = inlined_call_operand.vmem [shape: bf16[2,64,32], index: 7, kind: input, shape index: {}]   ;;  %s2916_s8 = inlined_call_operand.vmem [shape: f32[2,6,32], index: 8, kind: input, shape index: {}]   ;;  %s2917_s9 = inlined_call_operand.vmem [shape: bf16[32,32], index: 9, kind: input, shape index: {}]   ;;  %s2918_s10 = inlined_call_operand.vmem [shape: f32[1,32], index: 10, kind: input, shape index: {}]   ;;  %s2919_s11 = inlined_call_operand.vmem [shape: bf16[32,128], index: 11, kind: input, shape index: {}]   ;;  %s2920_s12 = inlined_call_operand.vmem [shape: f32[1,128], index: 12, kind: input, shape index: {}]   ;;  %s2921_s13 = inlined_call_operand.hbm [shape: f32[2,128], index: 13, kind: output, shape index: {}]  }
   0x1   :  { %v46_v0 = vld [vmem:[%s2908_s0] sm:$0xff] }
   0x2   :  { %v51_v1 = vsel %vm50_vm0, %v46_v0, 0.0 }
   0x3   :  { %52 = vadd.xlane.f32.xlu0 %v51_v1 }
   0x4   :  { %18 = vsyncpa [#allocation3], 0  ;;  %v47_v2 = vld [vmem:[%s2908_s0 + $0x8] sm:$0xff]  ;;  %v2343_v4 = vmov 32.0   ;;  %v2145_v23 = vld [vmem:[%s2910_s2] sm:$0xff]  ;;  %s2344_s21 = smov 104  }
   0x5   :  { %v54_v3 = vsel %vm50_vm0, %v47_v2, 0.0  ;;  %2217 = vrcp.f32 %v2343_v4  ;;  %v2146_v21 = vld [vmem:[%s2910_s2 + $0x8] sm:$0xff]  ;;  %v2209_v42 = vld [vmem:[%s2909_s1] ss:$0 sm:$0xff]  ;;  %v2210_v47 = vld [vmem:[%s2909_s1 + $0x1] ss:$0 sm:$0xff] }
   0x6   :  { %139 = vmatpush.bf16.msra.mxu0 %v2146_v21  ;;  %v2211_v52 = vld [vmem:[%s2911_s3] ss:$0 sm:$0xff]  ;;  %s2345_s1 = smov 120   ;;  %s2346_s22 = smov 112   ;;  %vm180_vm8 = vcmask 64512   ;;  %vm469_vm9 = vcmask 1043456  }
   0x7   :  { %s2347_s23 = smov 96   ;;  %s2348_s24 = smov 64   ;;  %vm659_vm10 = vcmask 130048   ;;  %vm662_vm11 = vcmask 195584  }
   0x8   :  { %s2349_s25 = smov 8   ;;  %s2350_s26 = smov 24  }
   0x9   :  { %s2351_s27 = smov 16  }
   0xa   :  { %140 = vmatpush.bf16.msra.mxu0 %v2145_v23 }
   0xb   :  { %55 = vadd.xlane.f32.xlu0 %v54_v3  ;;  %v2218_v5 = vpop.eup %2217 }
   0xc   :  { %v58_v6 = vmul.f32 32.0, %v2218_v5  ;;  %vm62_vm1 = vweird.f32 %v2218_v5 }
   0xe   :  { %v59_v7 = vsub.f32 1.0, %v58_v6 }
  0x10   :  { %v60_v8 = vmul.f32 %v2218_v5, %v59_v7 }
  0x12   :  { %v61_v9 = vadd.f32 %v2218_v5, %v60_v8 }
  0x14   :  { %v2431_v10 = vsel %vm62_vm1, %v2218_v5, %v61_v9 }
  0x76   :  { %v53_v11 = vpop.xlane.xlu0 %52 }
  0x77   :  { %v64_v12 = vmul.f32 %v2431_v10, %v53_v11 }
  0x79   :  { %v66_v13 = vsub.f32 %v46_v0, %v64_v12 }
  0x7b   :  { %v68_v14 = vmul.f32 %v66_v13, %v66_v13 }
  0x7d   :  { %v70_v15 = vsel %vm50_vm0, %v68_v14, 0.0 }
  0x7e   :  { %71 = vadd.xlane.f32.xlu1 %v70_v15  ;;  %v56_v16 = vpop.xlane.xlu0 %55 }
  0x7f   :  { %v65_v17 = vmul.f32 %v2431_v10, %v56_v16 }
  0x81   :  { %v67_v18 = vsub.f32 %v47_v2, %v65_v17 }
  0x83   :  { %v69_v19 = vmul.f32 %v67_v18, %v67_v18 }
  0x85   :  { %v73_v20 = vsel %vm50_vm0, %v69_v19, 0.0 }
  0x86   :  { %74 = vadd.xlane.f32.xlu1 %v73_v20 }
  0xf1   :  { %v72_v22 = vpop.xlane.xlu1 %71 }
  0xf2   :  { %v76_v24 = vmul.f32 %v72_v22, %v2431_v10 }
  0xf4   :  { %v78_v25 = vadd.f32 1e-05, %v76_v24 }
  0xf6   :  { %2219 = vrsqrt.f32 %v78_v25  ;;  %vm86_vm3 = vweird.f32 %v78_v25 }
  0xf9   :  { %v75_v26 = vpop.xlane.xlu1 %74 }
  0xfa   :  { %v77_v27 = vmul.f32 %v75_v26, %v2431_v10 }
  0xfc   :  { %v2220_v28 = vpop.eup %2219  ;;  %v79_v29 = vadd.f32 1e-05, %v77_v27 }
  0xfd   :  { %v81_v30 = vmul.f32 %v2220_v28, %v78_v25  ;;  %vm87_vm2 = vweird.f32 %v2220_v28 }
  0xfe   :  { %2221 = vrsqrt.f32 %v79_v29  ;;  %vm88_vm4 = vmor %vm86_vm3, %vm87_vm2  ;;  %vm96_vm6 = vweird.f32 %v79_v29 }
  0xff   :  { %v82_v31 = vmul.f32 %v2220_v28, %v81_v30 }
 0x101   :  { %v83_v32 = vmul.f32 0.5, %v82_v31 }
 0x103   :  { %v84_v33 = vsub.f32 1.5, %v83_v32 }
 0x104   :  { %v2222_v34 = vpop.eup %2221 }
 0x105   :  { %v85_v35 = vmul.f32 %v2220_v28, %v84_v33  ;;  %v91_v36 = vmul.f32 %v2222_v34, %v79_v29  ;;  %vm97_vm5 = vweird.f32 %v2222_v34 }
 0x106   :  { %vm98_vm7 = vmor %vm96_vm6, %vm97_vm5 }
 0x107   :  { %v92_v37 = vmul.f32 %v2222_v34, %v91_v36  ;;  %v89_v38 = vsel %vm88_vm4, %v2220_v28, %v85_v35 }
 0x108   :  { %v100_v41 = vmul.f32 %v89_v38, %v66_v13 }
 0x109   :  { %v93_v39 = vmul.f32 0.5, %v92_v37 }
 0x10a   :  { %v103_v46 = vmul.f32 %v2209_v42, %v100_v41 }
 0x10b   :  { %v94_v40 = vsub.f32 1.5, %v93_v39 }
 0x10c   :  { %v2451_v49 = vadd.f32 %v2210_v47, %v103_v46 }
 0x10d   :  { %v95_v43 = vmul.f32 %v2222_v34, %v94_v40 }
 0x10f   :  { %v99_v44 = vsel %vm98_vm7, %v2222_v34, %v95_v43 }
 0x110   :  { %v101_v45 = vmul.f32 %v99_v44, %v67_v18 }
 0x112   :  { %v104_v48 = vmul.f32 %v2209_v42, %v101_v45 }
 0x114   :  { %v2453_v50 = vadd.f32 %v2210_v47, %v104_v48 }
 0x116   :  { %v113_v51 = vpack.c.bf16 %v2453_v50, %v2451_v49 }
 0x118   :  { %1988 = vmatmul.msk.bf16.vlgmr.msra.gmra.mxu0 %vm50_vm0, %v113_v51 }
 0x195   :  { %v142_v53 = vpop.f32.mrf.mxu0 }
 0x196   :  { %v143_v54 = vadd.f32 %v2211_v52, %v142_v53 }
 0x198   :  { %161 = vrot.lane.b32.xlu1 %v143_v54, %s2344_s21  ;;  %149 = vrot.lane.b32.xlu2 %v143_v54, %s2345_s1  ;;  %v167_v60 = vpack.c.bf16 %v143_v54, %v143_v54 }
 0x19a   :  { %v176_v61 = vunpack.c.l.b16 %v167_v60 }
 0x19c   :  { %v177_v62 = vpack.c.b16 %v176_v61, %v176_v61 }
 0x19d   :  { %v144_v55 = vpop.f32.mrf.mxu0 }
 0x19e   :  { %v145_v56 = vadd.f32 %v2211_v52, %v144_v55 }
 0x1a0   :  { %157 = vrot.lane.b32.xlu0 %v145_v56, %s2346_s22  ;;  %151 = vrot.lane.b32.xlu2 %v145_v56, %s2345_s1  ;;  %v168_v57 = vpack.c.bf16 %v145_v56, %v145_v56 }
 0x1a2   :  { %v201_v58 = vunpack.c.l.b16 %v168_v57 }
 0x1a4   :  { %v202_v59 = vpack.c.b16 %v201_v58, %v201_v58 }
 0x1a8   :  { %155 = vrot.lane.b32.xlu2 %v143_v54, %s2346_s22 }
 0x1b0   :  { %163 = vrot.lane.b32.xlu2 %v145_v56, %s2344_s21 }
 0x1b8   :  { %203 = vrot.lane.b32.xlu2 %v202_v59, %s2347_s23 }
 0x1c0   :  { %178 = vrot.lane.b32.xlu2 %v177_v62, %s2347_s23 }
 0x1f2   :  { %v150_v63 = vpop.permute.xlu2 %149 }
 0x1f3   :  { %v169_v0 = vpack.c.bf16 %v150_v63, %v150_v63 }
 0x1f5   :  { %v225_v1 = vunpack.c.l.b16 %v169_v0 }
 0x1f7   :  { %v226_v2 = vpack.c.b16 %v225_v1, %v225_v1 }
 0x1f9   :  { %227 = vrot.lane.b32.xlu0 %v226_v2, %s2347_s23 }
 0x1fa   :  { %v152_v3 = vpop.permute.xlu2 %151 }
 0x1fb   :  { %v170_v4 = vpack.c.bf16 %v152_v3, %v152_v3 }
 0x1fd   :  { %v249_v5 = vunpack.c.l.b16 %v170_v4 }
 0x1ff   :  { %v2470_v6 = vpack.c.b16 %v249_v5, %v249_v5 }
 0x201   :  { %251 = vrot.lane.b32.xlu1 %v2470_v6, %s2347_s23 }
 0x202   :  { %v156_v7 = vpop.permute.xlu2 %155 }
 0x203   :  { %v171_v8 = vpack.c.bf16 %v156_v7, %v156_v7 }
 0x205   :  { %v273_v9 = vunpack.c.l.b16 %v171_v8 }
 0x207   :  { %v2474_v11 = vpack.c.b16 %v273_v9, %v273_v9 }
 0x209   :  { %275 = vrot.lane.b32.xlu1 %v2474_v11, %s2347_s23 }
 0x20a   :  { %v162_v12 = vpop.permute.xlu1 %161  ;;  %v164_v13 = vpop.permute.xlu2 %163 }
 0x20b   :  { %v173_v14 = vpack.c.bf16 %v162_v12, %v162_v12  ;;  %v174_v22 = vpack.c.bf16 %v164_v13, %v164_v13 }
 0x20d   :  { %v321_v15 = vunpack.c.l.b16 %v173_v14  ;;  %v345_v25 = vunpack.c.l.b16 %v174_v22 }
 0x20f   :  { %v2478_v16 = vpack.c.b16 %v321_v15, %v321_v15  ;;  %v2491_v27 = vpack.c.b16 %v345_v25, %v345_v25 }
 0x211   :  { %507 = vrot.lane.b32.xlu1 %v226_v2, %s2348_s24  ;;  %323 = vrot.lane.b32.xlu2 %v2478_v16, %s2347_s23 }
 0x212   :  { %v158_v17 = vpop.permute.xlu0 %157  ;;  %v204_v18 = vpop.permute.xlu2 %203 }
 0x213   :  { %v172_v19 = vpack.c.bf16 %v158_v17, %v158_v17  ;;  %v209_v20 = vsel %vm180_vm8, %v204_v18, 0 }
 0x214   :  { %218 = vmatpush.bf16.xpose.msra.mxu2 %v209_v20 }
 0x215   :  { %v297_v21 = vunpack.c.l.b16 %v172_v19 }
 0x217   :  { %v2484_v23 = vpack.c.b16 %v297_v21, %v297_v21 }
 0x219   :  { %299 = vrot.lane.b32.xlu0 %v2484_v23, %s2347_s23  ;;  %486 = vrot.lane.b32.xlu2 %v202_v59, %s2348_s24 }
 0x21a   :  { %v179_v24 = vpop.permute.xlu2 %178 }
 0x21b   :  { %1990 = vmatmul.msk.bf16.vlgmr.msra.gmra.mxu2 %vm180_vm8, %v168_v57  ;;  %v185_v26 = vsel %vm180_vm8, %v179_v24, 0 }
 0x21c   :  { %194 = vmatpush.bf16.xpose.msra.mxu1 %v185_v26 }
 0x221   :  { %347 = vrot.lane.b32.xlu0 %v2491_v27, %s2347_s23 }
 0x223   :  { %1989 = vmatmul.msk.bf16.vlgmr.msra.gmra.mxu1 %vm180_vm8, %v167_v60 }
 0x229   :  { %464 = vrot.lane.b32.xlu0 %v177_v62, %s2348_s24 }
 0x26b   :  { %v228_v28 = vpop.permute.xlu0 %227  ;;  %v324_v29 = vpop.permute.xlu2 %323 }
 0x26c   :  { %v233_v30 = vsel %vm180_vm8, %v228_v28, 0  ;;  %v329_v31 = vsel %vm180_vm8, %v324_v29, 0 }
 0x26d   :  { %242 = vmatpush.bf16.xpose.msra.mxu3 %v233_v30 }
 0x273   :  { %v252_v32 = vpop.permute.xlu1 %251  ;;  %v487_v38 = vpop.permute.xlu2 %486 }
 0x274   :  { %1991 = vmatmul.msk.bf16.vlgmr.msra.gmra.mxu3 %vm180_vm8, %v169_v0  ;;  %v257_v33 = vsel %vm180_vm8, %v252_v32, 0  ;;  %v492_v41 = vsel %vm469_vm9, %v487_v38, 0 }
 0x275   :  { %338 = vmatpush.bf16.xpose.msrb.mxu3 %v329_v31  ;;  %266 = vmatpush.bf16.xpose.msrb.mxu0 %v257_v33 }
 0x27b   :  { %v276_v34 = vpop.permute.xlu1 %275 }
 0x27c   :  { %1992 = vmatmul.msk.bf16.vlgmr.msrb.gmra.mxu0 %vm180_vm8, %v170_v4  ;;  %v281_v35 = vsel %vm180_vm8, %v276_v34, 0 }
 0x27d   :  { %290 = vmatpush.bf16.xpose.msrb.mxu1 %v281_v35 }
 0x283   :  { %v508_v36 = vpop.permute.xlu1 %507 }
 0x284   :  { %v513_v37 = vsel %vm469_vm9, %v508_v36, 0  ;;  %1993 = vmatmul.msk.bf16.vlgmr.msrb.gmra.mxu1 %vm180_vm8, %v171_v8  ;;  %1995 = vmatmul.msk.bf16.vlgmr.msrb.gmra.mxu3 %vm180_vm8, %v173_v14 }
 0x285   :  { %522 = vmatpush.bf16.msra.mxu3 %v513_v37 }
 0x28b   :  { %v300_v39 = vpop.permute.xlu0 %299 }
 0x28c   :  { %v305_v40 = vsel %vm180_vm8, %v300_v39, 0 }
 0x28d   :  { %314 = vmatpush.bf16.xpose.msrb.mxu2 %v305_v40 }
 0x293   :  { %v348_v42 = vpop.permute.xlu0 %347 }
 0x294   :  { %v353_v43 = vsel %vm180_vm8, %v348_v42, 0  ;;  %1994 = vmatmul.msk.bf16.vlgmr.msrb.gmra.mxu2 %vm180_vm8, %v172_v19 }
 0x295   :  { %501 = vmatpush.bf16.msra.mxu2 %v492_v41  ;;  %362 = vmatpush.bf16.xpose.msra.mxu0 %v353_v43 }
 0x29b   :  { %v465_v44 = vpop.permute.xlu0 %464 }
 0x29c   :  { %v471_v45 = vsel %vm469_vm9, %v465_v44, 0  ;;  %1996 = vmatmul.msk.bf16.vlgmr.msra.gmra.mxu0 %vm180_vm8, %v174_v22 }
 0x29d   :  { %480 = vmatpush.bf16.msra.mxu1 %v471_v45 }
 0x29e   :  { %v220_v46 = vpop.f32.mrf.mxu2 }
 0x29f   :  { %v371_v47 = vsel %vm180_vm8, %v220_v46, -inf }
 0x2a0   :  { %372 = vmax.xlane.f32.xlu2 %v371_v47  ;;  %v196_v48 = vpop.f32.mrf.mxu1 }
 0x2a1   :  { %v368_v51 = vsel %vm180_vm8, %v196_v48, -inf }
 0x2a2   :  { %369 = vmax.xlane.f32.xlu0 %v368_v51 }
 0x2a6   :  { %v222_v52 = vpop.f32.mrf.mxu2 }
 0x2a8   :  { %v198_v53 = vpop.f32.mrf.mxu1 }
 0x2f7   :  { %v244_v54 = vpop.f32.mrf.mxu3 }
 0x2f8   :  { %v374_v55 = vsel %vm180_vm8, %v244_v54, -inf }
 0x2f9   :  { %v268_v56 = vpop.f32.mrf.mxu0  ;;  %375 = vmax.xlane.f32.xlu1 %v374_v55 }
 0x2fa   :  { %v377_v0 = vsel %vm180_vm8, %v268_v56, -inf }
 0x2ff   :  { %v246_v57 = vpop.f32.mrf.mxu3 }
 0x301   :  { %v270_v58 = vpop.f32.mrf.mxu0  ;;  %v292_v59 = vpop.f32.mrf.mxu1 }
 0x302   :  { %v380_v60 = vsel %vm180_vm8, %v292_v59, -inf }
 0x303   :  { %381 = vmax.xlane.f32.xlu2 %v380_v60 }
 0x307   :  { %v340_v61 = vpop.f32.mrf.mxu3 }
 0x308   :  { %v386_v62 = vsel %vm180_vm8, %v340_v61, -inf }
 0x309   :  { %v294_v63 = vpop.f32.mrf.mxu1  ;;  %387 = vmax.xlane.f32.xlu0 %v386_v62 }
 0x30b   :  { %378 = vmax.xlane.f32.xlu2 %v377_v0 }
 0x30f   :  { %v342_v1 = vpop.f32.mrf.mxu3 }
 0x313   :  { %v373_v2 = vpop.xlane.xlu2 %372 }
 0x314   :  { %v393_v3 = vsub.f32 %v220_v46, %v373_v2 }
 0x315   :  { %v370_v4 = vpop.xlane.xlu0 %369 }
 0x316   :  { %v402_v5 = vmul.f32 1.442695, %v393_v3  ;;  %v392_v7 = vsub.f32 %v196_v48, %v370_v4 }
 0x317   :  { %v2518_v8 = vpop.f32.mrf.mxu2 }
 0x318   :  { %2223 = vpow2.f32 %v402_v5  ;;  %v400_v9 = vmul.f32 1.442695, %v392_v7  ;;  %v383_v20 = vsel %vm180_vm8, %v2518_v8, -inf }
 0x319   :  { %v2520_v12 = vpop.f32.mrf.mxu0 }
 0x31a   :  { %2225 = vpow2.f32 %v400_v9  ;;  %v389_v21 = vsel %vm180_vm8, %v2520_v12, -inf }
 0x31e   :  { %v2224_v13 = vpop.eup %2223 }
 0x31f   :  { %v318_v14 = vpop.f32.mrf.mxu2  ;;  %v419_v15 = vsel %vm180_vm8, %v2224_v13, 0.0 }
 0x320   :  { %v2226_v17 = vpop.eup %2225  ;;  %420 = vadd.xlane.f32.xlu0 %v419_v15 }
 0x321   :  { %v366_v18 = vpop.f32.mrf.mxu0  ;;  %v416_v19 = vsel %vm180_vm8, %v2226_v17, 0.0 }
 0x322   :  { %417 = vadd.xlane.f32.xlu1 %v416_v19 }
 0x323   :  { %528 = vrot.lane.b32.xlu2 %v2470_v6, %s2348_s24 }
 0x32a   :  { %384 = vmax.xlane.f32.xlu1 %v383_v20 }
 0x332   :  { %390 = vmax.xlane.f32.xlu1 %v389_v21 }
 0x34b   :  { %570 = vrot.lane.b32.xlu1 %v2484_v23, %s2348_s24 }
 0x36c   :  { %v376_v22 = vpop.xlane.xlu1 %375 }
 0x36d   :  { %v394_v26 = vsub.f32 %v244_v54, %v376_v22 }
 0x36f   :  { %v404_v29 = vmul.f32 1.442695, %v394_v26 }
 0x376   :  { %v382_v24 = vpop.xlane.xlu2 %381 }
 0x377   :  { %v396_v25 = vsub.f32 %v292_v59, %v382_v24 }
 0x379   :  { %v408_v28 = vmul.f32 1.442695, %v396_v25 }
 0x37b   :  { %2227 = vpow2.f32 %v408_v28 }
 0x37c   :  { %v388_v30 = vpop.xlane.xlu0 %387  ;;  %2229 = vpow2.f32 %v404_v29 }
 0x37d   :  { %v398_v6 = vsub.f32 %v340_v61, %v388_v30 }
 0x37e   :  { %v379_v31 = vpop.xlane.xlu2 %378 }
 0x37f   :  { %v412_v32 = vmul.f32 1.442695, %v398_v6  ;;  %v395_v33 = vsub.f32 %v268_v56, %v379_v31 }
 0x381   :  { %v2532_v34 = vpop.eup %2227  ;;  %2231 = vpow2.f32 %v412_v32  ;;  %v406_v35 = vmul.f32 1.442695, %v395_v33 }
 0x382   :  { %v428_v23 = vsel %vm180_vm8, %v2532_v34, 0.0  ;;  %v2230_v36 = vpop.eup %2229 }
 0x383   :  { %2233 = vpow2.f32 %v406_v35  ;;  %429 = vadd.xlane.f32.xlu2 %v428_v23  ;;  %v422_v42 = vsel %vm180_vm8, %v2230_v36, 0.0 }
 0x386   :  { %v529_v37 = vpop.permute.xlu2 %528 }
 0x387   :  { %v2232_v38 = vpop.eup %2231  ;;  %v534_v39 = vsel %vm469_vm9, %v529_v37, 0 }
 0x388   :  { %543 = vmatpush.bf16.msrb.mxu0 %v534_v39  ;;  %v434_v40 = vsel %vm180_vm8, %v2232_v38, 0.0 }
 0x389   :  { %v2234_v41 = vpop.eup %2233  ;;  %435 = vadd.xlane.f32.xlu1 %v434_v40 }
 0x38a   :  { %v425_v43 = vsel %vm180_vm8, %v2234_v41, 0.0 }
 0x38b   :  { %423 = vadd.xlane.f32.xlu2 %v422_v42  ;;  %426 = vadd.xlane.f32.xlu0 %v425_v43 }
 0x393   :  { %v421_v44 = vpop.xlane.xlu0 %420 }
 0x394   :  { %2235 = vrcp.f32 %v421_v44 }
 0x395   :  { %v418_v45 = vpop.xlane.xlu1 %417 }
 0x396   :  { %2237 = vrcp.f32 %v418_v45 }
 0x39a   :  { %v2236_v46 = vpop.eup %2235 }
 0x39b   :  { %v449_v47 = vmul.f32 %v2236_v46, %v2224_v13 }
 0x39c   :  { %v2238_v48 = vpop.eup %2237 }
 0x39d   :  { %v457_v51 = vpack.c.bf16 %v449_v47, %v449_v47  ;;  %v448_v52 = vmul.f32 %v2238_v48, %v2226_v17  ;;  %v385_v53 = vpop.xlane.xlu1 %384 }
 0x39e   :  { %v397_v54 = vsub.f32 %v2518_v8, %v385_v53 }
 0x39f   :  { %v456_v55 = vpack.c.bf16 %v448_v52, %v448_v52  ;;  %1998 = vmatmul.msk.bf16.vlgmr.msra.gmra.mxu2 %vm180_vm8, %v457_v51 }
 0x3a0   :  { %v410_v56 = vmul.f32 1.442695, %v397_v54  ;;  %v2148_v54 = vld [vmem:[%s2912_s4 + $0x8] sm:$0xff] }
 0x3a1   :  { %1997 = vmatmul.msk.bf16.vlgmr.msra.gmra.mxu1 %vm180_vm8, %v456_v55  ;;  %v2147_v55 = vld [vmem:[%s2912_s4] sm:$0xff] }
 0x3a2   :  { %2239 = vpow2.f32 %v410_v56  ;;  %612 = vrot.lane.b32.xlu1 %v2491_v27, %s2348_s24 }
 0x3a3   :  { %591 = vrot.lane.b32.xlu2 %v2478_v16, %s2348_s24 }
 0x3a5   :  { %v391_v57 = vpop.xlane.xlu1 %390 }
 0x3a6   :  { %v399_v58 = vsub.f32 %v2520_v12, %v391_v57 }
 0x3a8   :  { %v2240_v59 = vpop.eup %2239  ;;  %v414_v60 = vmul.f32 1.442695, %v399_v58 }
 0x3a9   :  { %v431_v61 = vsel %vm180_vm8, %v2240_v59, 0.0 }
 0x3aa   :  { %2241 = vpow2.f32 %v414_v60  ;;  %432 = vadd.xlane.f32.xlu0 %v431_v61 }
 0x3b0   :  { %v2242_v62 = vpop.eup %2241 }
 0x3b1   :  { %v437_v63 = vsel %vm180_vm8, %v2242_v62, 0.0 }
 0x3b2   :  { %438 = vadd.xlane.f32.xlu0 %v437_v63 }
 0x3bd   :  { %v571_v0 = vpop.permute.xlu1 %570 }
 0x3be   :  { %v576_v1 = vsel %vm469_vm9, %v571_v0, 0 }
 0x3bf   :  { %585 = vmatpush.bf16.msrb.mxu2 %v576_v1 }
 0x3c6   :  { %549 = vrot.lane.b32.xlu0 %v2474_v11, %s2348_s24 }
 0x3f6   :  { %v430_v16 = vpop.xlane.xlu2 %429 }
 0x3fc   :  { %v436_v13 = vpop.xlane.xlu1 %435 }
 0x3fe   :  { %v427_v27 = vpop.xlane.xlu0 %426  ;;  %v424_v2 = vpop.xlane.xlu2 %423 }
 0x3ff   :  { %2243 = vrcp.f32 %v427_v27 }
 0x400   :  { %2245 = vrcp.f32 %v424_v2 }
 0x401   :  { %2247 = vrcp.f32 %v436_v13 }
 0x405   :  { %v2244_v3 = vpop.eup %2243 }
 0x406   :  { %v2246_v4 = vpop.eup %2245  ;;  %v451_v5 = vmul.f32 %v2244_v3, %v2234_v41  ;;  %v592_v7 = vpop.permute.xlu2 %591 }
 0x407   :  { %v450_v8 = vmul.f32 %v2246_v4, %v2230_v36  ;;  %v597_v9 = vsel %vm469_vm9, %v592_v7, 0  ;;  %v2248_v11 = vpop.eup %2247  ;;  %v2582_v7 = vld [vmem:[%s2916_s8] sm:$0x3f] }
 0x408   :  { %v459_v12 = vpack.c.bf16 %v451_v5, %v451_v5  ;;  %606 = vmatpush.bf16.msrb.mxu3 %v597_v9  ;;  %v454_v17 = vmul.f32 %v2248_v11, %v2232_v38 }
 0x409   :  { %v458_v14 = vpack.c.bf16 %v450_v8, %v450_v8  ;;  %v670_v8 = vperm.slane %v2582_v7, 0 }
 0x40a   :  { %2000 = vmatmul.msk.bf16.vlgmr.msrb.gmra.mxu0 %vm180_vm8, %v459_v12  ;;  %v462_v19 = vpack.c.bf16 %v454_v17, %v454_v17 }
 0x40b   :  { %1999 = vmatmul.msk.bf16.vlgmr.msra.gmra.mxu3 %vm180_vm8, %v458_v14 }
 0x414   :  { %v613_v15 = vpop.permute.xlu1 %612 }
 0x415   :  { %v618_v18 = vsel %vm469_vm9, %v613_v15, 0 }
 0x416   :  { %627 = vmatpush.bf16.msra.mxu0 %v618_v18 }
 0x41b   :  { %2003 = vmatmul.msk.bf16.vlgmr.msrb.gmra.mxu3 %vm180_vm8, %v462_v19 }
 0x41d   :  { %v433_v20 = vpop.xlane.xlu0 %432 }
 0x41e   :  { %2249 = vrcp.f32 %v433_v20  ;;  %v482_v21 = vpop.f32.mrf.mxu1 }
 0x422   :  { %v503_v22 = vpop.f32.mrf.mxu2 }
 0x424   :  { %v2250_v24 = vpop.eup %2249 }
 0x425   :  { %v453_v25 = vmul.f32 %v2250_v24, %v2240_v59  ;;  %v439_v26 = vpop.xlane.xlu0 %438 }
 0x426   :  { %2251 = vrcp.f32 %v439_v26  ;;  %v484_v28 = vpop.f32.mrf.mxu1 }
 0x427   :  { %v461_v29 = vpack.c.bf16 %v453_v25, %v453_v25  ;;  %2253 = vrcp.f32 %v430_v16 }
 0x429   :  { %2002 = vmatmul.msk.bf16.vlgmr.msrb.gmra.mxu2 %vm180_vm8, %v461_v29 }
 0x42a   :  { %v505_v30 = vpop.f32.mrf.mxu2 }
 0x42c   :  { %v2252_v6 = vpop.eup %2251 }
 0x42d   :  { %v455_v31 = vmul.f32 %v2252_v6, %v2242_v62  ;;  %v2254_v33 = vpop.eup %2253 }
 0x42e   :  { %v452_v35 = vmul.f32 %v2254_v33, %v2532_v34 }
 0x42f   :  { %v463_v32 = vpack.c.bf16 %v455_v31, %v455_v31 }
 0x430   :  { %v460_v37 = vpack.c.bf16 %v452_v35, %v452_v35 }
 0x431   :  { %2004 = vmatmul.msk.bf16.vlgmr.msra.gmra.mxu0 %vm180_vm8, %v463_v32  ;;  %v2149_v32 = vld [vmem:[%s2913_s5] sm:$0xff] }
 0x438   :  { %v550_v23 = vpop.permute.xlu0 %549 }
 0x439   :  { %v555_v36 = vsel %vm469_vm9, %v550_v23, 0 }
 0x43a   :  { %564 = vmatpush.bf16.msrb.mxu1 %v555_v36 }
 0x43d   :  { %2001 = vmatmul.msk.bf16.vlgmr.msrb.gmra.mxu1 %vm180_vm8, %v460_v37 }
 0x43e   :  { %692 = vmatpush.bf16.msra.mxu1 %v2148_v54 }
 0x442   :  { %693 = vmatpush.bf16.msra.mxu1 %v2147_v55 }
 0x487   :  { %v545_v38 = vpop.f32.mrf.mxu0 }
 0x48e   :  { %v524_v39 = vpop.f32.mrf.mxu3 }
 0x48f   :  { %v2179_v40 = vpack.i.bf16 %v545_v38, %v524_v39  ;;  %v547_v41 = vpop.f32.mrf.mxu0 }
 0x491   :  { %2180 = vrot.lane.b32.xlu0 %v2179_v40, %s2349_s25 }
 0x496   :  { %v526_v42 = vpop.f32.mrf.mxu3 }
 0x49e   :  { %v608_v43 = vpop.f32.mrf.mxu3 }
 0x4a6   :  { %v610_v44 = vpop.f32.mrf.mxu3 }
 0x4ac   :  { %v587_v45 = vpop.f32.mrf.mxu2 }
 0x4ae   :  { %v629_v46 = vpop.f32.mrf.mxu0 }
 0x4af   :  { %v2189_v34 = vpack.i.bf16 %v629_v46, %v608_v43 }
 0x4b1   :  { %2190 = vrot.lane.b32.xlu1 %v2189_v34, %s2350_s26 }
 0x4b4   :  { %v589_v47 = vpop.f32.mrf.mxu2 }
 0x4b5   :  { %v746_v47 = vperm.slane %v2582_v7, 1 }
 0x4b6   :  { %v631_v48 = vpop.f32.mrf.mxu0 }
 0x4ba   :  { %v566_v51 = vpop.f32.mrf.mxu1 }
 0x4bb   :  { %v2184_v52 = vpack.i.bf16 %v587_v45, %v566_v51 }
 0x4bd   :  { %2185 = vrot.lane.b32.xlu2 %v2184_v52, %s2351_s27 }
 0x4c2   :  { %v568_v53 = vpop.f32.mrf.mxu1 }
 0x4c3   :  { %v749_v53 = vperm.slane %v2582_v7, 2 }
 0x503   :  { %v2181_v56 = vpop.permute.xlu0 %2180 }
 0x504   :  { %v2183_v58 = vunpack.i.h.bf16 %v2181_v56  ;;  %v2182_v59 = vunpack.i.l.bf16 %v2181_v56 }
 0x506   :  { %v658_v63 = vsel %vm180_vm8, %v503_v22, %v2183_v58  ;;  %v657_v0 = vsel %vm180_vm8, %v482_v21, %v2182_v59 }
 0x517   :  { %v2186_v57 = vpop.permute.xlu2 %2185 }
 0x518   :  { %v2188_v60 = vunpack.i.h.bf16 %v2186_v57  ;;  %v2187_v61 = vunpack.i.l.bf16 %v2186_v57 }
 0x51a   :  { %v661_v27 = vsel %vm659_vm10, %v658_v63, %v2188_v60  ;;  %v660_v2 = vsel %vm659_vm10, %v657_v0, %v2187_v61  ;;  %v2212_v60 = vld [vmem:[%s2914_s6] ss:$0 sm:$0xff] }
 0x523   :  { %v2191_v62 = vpop.permute.xlu1 %2190 }
 0x524   :  { %v2193_v1 = vunpack.i.h.bf16 %v2191_v62  ;;  %v2192_v16 = vunpack.i.l.bf16 %v2191_v62 }
 0x526   :  { %v663_v3 = vsel %vm662_vm11, %v660_v2, %v2192_v16  ;;  %v664_v4 = vsel %vm662_vm11, %v661_v27, %v2193_v1 }
 0x527   :  { %v669_v5 = vpack.c.bf16 %v664_v4, %v663_v3 }
 0x529   :  { %2013 = vmatmul.msk.bf16.vlgmr.msra.gmra.mxu1 %vm50_vm0, %v669_v5 }
 0x5a6   :  { %v695_v9 = vpop.f32.mrf.mxu1 }
 0x5a7   :  { %v696_v12 = vadd.f32 %v695_v9, %v670_v8 }
 0x5a9   :  { %v700_v13 = vadd.f32 %v696_v12, %v2451_v49 }
 0x5ab   :  { %v702_v14 = vsel %vm50_vm0, %v700_v13, 0.0 }
 0x5ac   :  { %703 = vadd.xlane.f32.xlu0 %v702_v14 }
 0x5ae   :  { %v697_v11 = vpop.f32.mrf.mxu1 }
 0x5af   :  { %v698_v15 = vadd.f32 %v697_v11, %v670_v8 }
 0x5b1   :  { %v701_v17 = vadd.f32 %v698_v15, %v2453_v50  ;;  %v2150_v50 = vld [vmem:[%s2913_s5 + $0x8] sm:$0xff] }
 0x5b2   :  { %782 = vmatpush.bf16.msra.mxu2 %v2150_v50 }
 0x5b3   :  { %v705_v18 = vsel %vm50_vm0, %v701_v17, 0.0 }
 0x5b4   :  { %706 = vadd.xlane.f32.xlu2 %v705_v18 }
 0x5b6   :  { %783 = vmatpush.bf16.msra.mxu2 %v2149_v32  ;;  %v2152_v32 = vld [vmem:[%s2915_s7 + $0x8] sm:$0xff] }
 0x61f   :  { %v704_v19 = vpop.xlane.xlu0 %703 }
 0x620   :  { %v708_v20 = vmul.f32 %v704_v19, %v2431_v10 }
 0x622   :  { %v710_v21 = vsub.f32 %v700_v13, %v708_v20 }
 0x624   :  { %v712_v22 = vmul.f32 %v710_v21, %v710_v21 }
 0x626   :  { %v714_v24 = vsel %vm50_vm0, %v712_v22, 0.0 }
 0x627   :  { %v707_v25 = vpop.xlane.xlu2 %706  ;;  %715 = vadd.xlane.f32.xlu1 %v714_v24 }
 0x628   :  { %v709_v49 = vmul.f32 %v707_v25, %v2431_v10 }
 0x62a   :  { %v711_v26 = vsub.f32 %v701_v17, %v709_v49  ;;  %v2154_v17 = vld [vmem:[%s2915_s7 + $0x18] sm:$0xff]  ;;  %v2153_v49 = vld [vmem:[%s2915_s7 + $0x10] sm:$0xff] }
 0x62b   :  { %920 = vmatpush.bf16.msra.mxu3 %v2154_v17 }
 0x62c   :  { %v713_v28 = vmul.f32 %v711_v26, %v711_v26 }
 0x62e   :  { %v717_v29 = vsel %vm50_vm0, %v713_v28, 0.0 }
 0x62f   :  { %718 = vadd.xlane.f32.xlu0 %v717_v29  ;;  %921 = vmatpush.bf16.msra.mxu3 %v2153_v49 }
 0x633   :  { %922 = vmatpush.bf16.msra.mxu3 %v2152_v32 }
 0x69a   :  { %v716_v30 = vpop.xlane.xlu1 %715 }
 0x69b   :  { %v720_v6 = vmul.f32 %v716_v30, %v2431_v10 }
 0x69d   :  { %v722_v31 = vadd.f32 1e-05, %v720_v6 }
 0x69f   :  { %2255 = vrsqrt.f32 %v722_v31  ;;  %vm730_vm13 = vweird.f32 %v722_v31 }
 0x6a2   :  { %v719_v33 = vpop.xlane.xlu0 %718 }
 0x6a3   :  { %v721_v35 = vmul.f32 %v719_v33, %v2431_v10 }
 0x6a5   :  { %v2256_v23 = vpop.eup %2255  ;;  %v723_v36 = vadd.f32 1e-05, %v721_v35 }
 0x6a6   :  { %v725_v37 = vmul.f32 %v2256_v23, %v722_v31  ;;  %vm731_vm12 = vweird.f32 %v2256_v23 }
 0x6a7   :  { %2257 = vrsqrt.f32 %v723_v36  ;;  %vm732_vm14 = vmor %vm730_vm13, %vm731_vm12  ;;  %vm740_vm1 = vweird.f32 %v723_v36 }
 0x6a8   :  { %v726_v38 = vmul.f32 %v2256_v23, %v725_v37 }
 0x6aa   :  { %v727_v39 = vmul.f32 0.5, %v726_v38  ;;  %v2151_v38 = vld [vmem:[%s2915_s7] sm:$0xff] }
 0x6ab   :  { %923 = vmatpush.bf16.msra.mxu3 %v2151_v38 }
 0x6ac   :  { %v728_v40 = vsub.f32 1.5, %v727_v39 }
 0x6ad   :  { %v2258_v41 = vpop.eup %2257 }
 0x6ae   :  { %v729_v42 = vmul.f32 %v2256_v23, %v728_v40  ;;  %v735_v43 = vmul.f32 %v2258_v41, %v723_v36  ;;  %vm741_vm15 = vweird.f32 %v2258_v41 }
 0x6af   :  { %vm742_vm2 = vmor %vm740_vm1, %vm741_vm15  ;;  %vm912_vm15 = vcmask 523264  }
 0x6b0   :  { %v736_v44 = vmul.f32 %v2258_v41, %v735_v43  ;;  %v733_v45 = vsel %vm732_vm14, %v2256_v23, %v729_v42 }
 0x6b1   :  { %v744_v48 = vmul.f32 %v733_v45, %v710_v21 }
 0x6b2   :  { %v737_v46 = vmul.f32 0.5, %v736_v44 }
 0x6b3   :  { %v747_v54 = vmul.f32 %v746_v47, %v744_v48 }
 0x6b4   :  { %v738_v34 = vsub.f32 1.5, %v737_v46 }
 0x6b5   :  { %v2603_v57 = vadd.f32 %v749_v53, %v747_v54 }
 0x6b6   :  { %v739_v51 = vmul.f32 %v2258_v41, %v738_v34 }
 0x6b8   :  { %v743_v52 = vsel %vm742_vm2, %v2258_v41, %v739_v51 }
 0x6b9   :  { %v745_v55 = vmul.f32 %v743_v52, %v711_v26 }
 0x6bb   :  { %v748_v56 = vmul.f32 %v746_v47, %v745_v55 }
 0x6bd   :  { %v2605_v58 = vadd.f32 %v749_v53, %v748_v56 }
 0x6bf   :  { %v756_v59 = vpack.c.bf16 %v2605_v58, %v2603_v57 }
 0x6c1   :  { %2022 = vmatmul.msk.bf16.vlgmr.msra.gmra.mxu2 %vm50_vm0, %v756_v59 }
 0x744   :  { %v785_v61 = vpop.f32.mrf.mxu2 }
 0x745   :  { %v2613_v62 = vadd.f32 %v2212_v60, %v785_v61 }
 0x747   :  { %v2616_v63 = vmul.f32 0.70710677, %v2613_v62 }
 0x749   :  { %v794_v0 = vmul.f32 %v2616_v63, %v2616_v63 }
 0x74b   :  { %v795_v1 = vmin.f32 %v794_v0, 16.0 }
 0x74c   :  { %v787_v16 = vpop.f32.mrf.mxu2 }
 0x74d   :  { %v796_v27 = vmul.f32 2.1237322e-06, %v795_v1  ;;  %v807_v2 = vmul.f32 3.8918573e-05, %v795_v1  ;;  %v2620_v3 = vadd.f32 %v2212_v60, %v787_v16 }
 0x74f   :  { %v797_v4 = vadd.f32 0.00028619796, %v796_v27  ;;  %v808_v5 = vadd.f32 0.001143296, %v807_v2  ;;  %v2623_v8 = vmul.f32 0.70710677, %v2620_v3 }
 0x751   :  { %v809_v9 = vmul.f32 %v808_v5, %v795_v1  ;;  %v834_v12 = vmul.f32 %v2623_v8, %v2623_v8  ;;  %v798_v13 = vmul.f32 %v797_v4, %v795_v1 }
 0x753   :  { %v810_v14 = vadd.f32 0.014752088, %v809_v9  ;;  %v835_v11 = vmin.f32 %v834_v12, 16.0  ;;  %v799_v20 = vadd.f32 0.0036580483, %v798_v13 }
 0x755   :  { %v811_v15 = vmul.f32 %v810_v14, %v795_v1  ;;  %v836_v18 = vmul.f32 2.1237322e-06, %v835_v11  ;;  %v847_v19 = vmul.f32 3.8918573e-05, %v835_v11  ;;  %v800_v29 = vmul.f32 %v799_v20, %v795_v1 }
 0x757   :  { %v812_v21 = vadd.f32 0.112945676, %v811_v15  ;;  %v837_v22 = vadd.f32 0.00028619796, %v836_v18  ;;  %v848_v24 = vadd.f32 0.001143296, %v847_v19 }
 0x758   :  { %v801_v35 = vadd.f32 0.05243302, %v800_v29 }
 0x759   :  { %v813_v25 = vmul.f32 %v812_v21, %v795_v1  ;;  %v838_v26 = vmul.f32 %v837_v22, %v835_v11  ;;  %v849_v28 = vmul.f32 %v848_v24, %v835_v11  ;;  %v790_v24 = vmul.f32 0.5, %v2613_v62 }
 0x75a   :  { %v802_v40 = vmul.f32 %v801_v35, %v795_v1 }
 0x75b   :  { %v814_v50 = vadd.f32 0.4994258, %v813_v25  ;;  %v839_v30 = vadd.f32 0.0036580483, %v838_v26  ;;  %v850_v6 = vadd.f32 0.014752088, %v849_v28 }
 0x75c   :  { %v803_v45 = vadd.f32 0.18741608, %v802_v40  ;;  %v791_v25 = vmul.f32 0.5, %v2620_v3 }
 0x75d   :  { %v815_v31 = vmul.f32 %v814_v50, %v795_v1  ;;  %v851_v33 = vmul.f32 %v850_v6, %v835_v11  ;;  %v840_v36 = vmul.f32 %v839_v30, %v835_v11  ;;  %v887_v50 = vperm.slane %v2582_v7, 3 }
 0x75e   :  { %v804_v51 = vmul.f32 %v803_v45, %v795_v1 }
 0x75f   :  { %v816_v23 = vadd.f32 1.0, %v815_v31  ;;  %v852_v37 = vadd.f32 0.112945676, %v851_v33  ;;  %v841_v41 = vadd.f32 0.05243302, %v840_v36 }
 0x760   :  { %v805_v59 = vadd.f32 1.1283791, %v804_v51 }
 0x761   :  { %2259 = vrcp.f32 %v816_v23  ;;  %v853_v39 = vmul.f32 %v852_v37, %v835_v11  ;;  %v842_v34 = vmul.f32 %v841_v41, %v835_v11  ;;  %v828_v53 = vand.u32 2147483648, %v816_v23 }
 0x762   :  { %v826_v55 = vand.u32 2147483647, %v816_v23  ;;  %vm822_vm4 = vweird.f32 %v816_v23  ;;  %v806_v4 = vmul.f32 %v805_v59, %v2616_v63 }
 0x763   :  { %v854_v42 = vadd.f32 0.4994258, %v853_v39  ;;  %v843_v54 = vadd.f32 0.18741608, %v842_v34  ;;  %v829_v0 = vor.u32 1.1754944e-38, %v828_v53 }
 0x764   :  { %vm827_vm6 = vcmp.eq.f32.partialorder %v826_v55, 8.507059e+37 }
 0x765   :  { %v855_v43 = vmul.f32 %v854_v42, %v835_v11  ;;  %v844_v16 = vmul.f32 %v843_v54, %v835_v11 }
 0x767   :  { %v2260_v44 = vpop.eup %2259  ;;  %v856_v47 = vadd.f32 1.0, %v855_v43  ;;  %v845_v1 = vadd.f32 1.1283791, %v844_v16 }
 0x768   :  { %v818_v46 = vmul.f32 %v2260_v44, %v816_v23  ;;  %vm823_vm3 = vweird.f32 %v2260_v44 }
 0x769   :  { %2261 = vrcp.f32 %v856_v47  ;;  %vm824_vm5 = vmor %vm822_vm4, %vm823_vm3  ;;  %v868_v9 = vand.u32 2147483648, %v856_v47  ;;  %v866_v14 = vand.u32 2147483647, %v856_v47  ;;  %vm862_vm12 = vweird.f32 %v856_v47 }
 0x76a   :  { %v819_v48 = vsub.f32 1.0, %v818_v46  ;;  %v846_v19 = vmul.f32 %v845_v1, %v2623_v8  ;;  %v2155_v46 = vld [vmem:[%s2910_s2 + $0x10] sm:$0xff] }
 0x76b   :  { %v869_v17 = vor.u32 1.1754944e-38, %v868_v9  ;;  %vm867_vm14 = vcmp.eq.f32.partialorder %v866_v14, 8.507059e+37  ;;  %v979_v9 = vperm.slane %v2582_v7, 5 }
 0x76c   :  { %v820_v52 = vmul.f32 %v2260_v44, %v819_v48 }
 0x76e   :  { %v821_v56 = vadd.f32 %v2260_v44, %v820_v52 }
 0x76f   :  { %v2262_v60 = vpop.eup %2261 }
 0x770   :  { %v825_v61 = vsel %vm824_vm5, %v2260_v44, %v821_v56  ;;  %v858_v27 = vmul.f32 %v2262_v60, %v856_v47  ;;  %vm863_vm7 = vweird.f32 %v2262_v60 }
 0x771   :  { %v830_v2 = vsel %vm827_vm6, %v829_v0, %v825_v61  ;;  %vm864_vm13 = vmor %vm862_vm12, %vm863_vm7 }
 0x772   :  { %v859_v5 = vsub.f32 1.0, %v858_v27  ;;  %v831_v12 = vmul.f32 %v830_v2, %v806_v4  ;;  %v976_v2 = vperm.slane %v2582_v7, 4 }
 0x774   :  { %v860_v13 = vmul.f32 %v2262_v60, %v859_v5  ;;  %v2023_v18 = vclamps-f32 %v831_v12, 1.0 }
 0x776   :  { %v861_v15 = vadd.f32 %v2262_v60, %v860_v13  ;;  %v874_v22 = vadd.f32 1.0, %v2023_v18 }
 0x778   :  { %v865_v11 = vsel %vm864_vm13, %v2262_v60, %v861_v15  ;;  %v876_v26 = vmul.f32 %v874_v22, %v790_v24 }
 0x779   :  { %v870_v20 = vsel %vm867_vm14, %v869_v17, %v865_v11 }
 0x77a   :  { %v871_v21 = vmul.f32 %v870_v20, %v846_v19  ;;  %v2213_v19 = vld [vmem:[%s2911_s3 + $0x1] ss:$0 sm:$0xff] }
 0x77c   :  { %v2024_v63 = vclamps-f32 %v871_v21, 1.0 }
 0x77e   :  { %v875_v49 = vadd.f32 1.0, %v2024_v63 }
 0x780   :  { %v877_v28 = vmul.f32 %v875_v49, %v791_v25 }
 0x782   :  { %v886_v29 = vpack.c.bf16 %v877_v28, %v876_v26 }
 0x784   :  { %2041 = vmatmul.msk.bf16.vlgmr.msra.gmra.mxu3 %vm912_vm15, %v886_v29 }
 0x807   :  { %v925_v8 = vpop.f32.mrf.mxu3 }
 0x808   :  { %v926_v30 = vadd.f32 %v925_v8, %v887_v50 }
 0x80a   :  { %v930_v6 = vadd.f32 %v926_v30, %v2603_v57 }
 0x80c   :  { %v932_v31 = vsel %vm50_vm0, %v930_v6, 0.0 }
 0x80d   :  { %933 = vadd.xlane.f32.xlu2 %v932_v31 }
 0x80f   :  { %v927_v32 = vpop.f32.mrf.mxu3 }
 0x810   :  { %v928_v62 = vadd.f32 %v927_v32, %v887_v50 }
 0x812   :  { %v931_v3 = vadd.f32 %v928_v62, %v2605_v58  ;;  %v2156_v58 = vld [vmem:[%s2910_s2 + $0x18] sm:$0xff] }
 0x813   :  { %1016 = vmatpush.bf16.msrb.mxu0 %v2156_v58 }
 0x814   :  { %v935_v33 = vsel %vm50_vm0, %v931_v3, 0.0 }
 0x815   :  { %936 = vadd.xlane.f32.xlu1 %v935_v33 }
 0x817   :  { %1017 = vmatpush.bf16.msrb.mxu0 %v2155_v46 }
 0x880   :  { %v934_v35 = vpop.xlane.xlu2 %933 }
 0x881   :  { %v938_v23 = vmul.f32 %v934_v35, %v2431_v10 }
 0x883   :  { %v940_v36 = vsub.f32 %v930_v6, %v938_v23 }
 0x885   :  { %v942_v37 = vmul.f32 %v940_v36, %v940_v36 }
 0x887   :  { %v944_v38 = vsel %vm50_vm0, %v942_v37, 0.0 }
 0x888   :  { %v937_v39 = vpop.xlane.xlu1 %936  ;;  %945 = vadd.xlane.f32.xlu0 %v944_v38 }
 0x889   :  { %v939_v57 = vmul.f32 %v937_v39, %v2431_v10 }
 0x88b   :  { %v941_v40 = vsub.f32 %v931_v3, %v939_v57 }
 0x88d   :  { %v943_v41 = vmul.f32 %v941_v40, %v941_v40 }
 0x88f   :  { %v947_v42 = vsel %vm50_vm0, %v943_v41, 0.0 }
 0x890   :  { %948 = vadd.xlane.f32.xlu2 %v947_v42 }
 0x8fb   :  { %v946_v43 = vpop.xlane.xlu0 %945 }
 0x8fc   :  { %v950_v44 = vmul.f32 %v946_v43, %v2431_v10 }
 0x8fe   :  { %v952_v45 = vadd.f32 1e-05, %v950_v44 }
 0x900   :  { %2263 = vrsqrt.f32 %v952_v45  ;;  %vm960_vm2 = vweird.f32 %v952_v45 }
 0x903   :  { %v949_v34 = vpop.xlane.xlu2 %948 }
 0x904   :  { %v951_v47 = vmul.f32 %v949_v34, %v2431_v10 }
 0x906   :  { %v2264_v48 = vpop.eup %2263  ;;  %v953_v51 = vadd.f32 1e-05, %v951_v47 }
 0x907   :  { %v955_v52 = vmul.f32 %v2264_v48, %v952_v45  ;;  %vm961_vm1 = vweird.f32 %v2264_v48 }
 0x908   :  { %2265 = vrsqrt.f32 %v953_v51  ;;  %vm962_vm3 = vmor %vm960_vm2, %vm961_vm1  ;;  %vm970_vm5 = vweird.f32 %v953_v51 }
 0x909   :  { %v956_v53 = vmul.f32 %v2264_v48, %v955_v52 }
 0x90b   :  { %v957_v54 = vmul.f32 0.5, %v956_v53 }
 0x90d   :  { %v958_v55 = vsub.f32 1.5, %v957_v54 }
 0x90e   :  { %v2266_v56 = vpop.eup %2265 }
 0x90f   :  { %v959_v59 = vmul.f32 %v2264_v48, %v958_v55  ;;  %v965_v60 = vmul.f32 %v2266_v56, %v953_v51  ;;  %vm971_vm4 = vweird.f32 %v2266_v56 }
 0x910   :  { %vm972_vm6 = vmor %vm970_vm5, %vm971_vm4 }
 0x911   :  { %v966_v61 = vmul.f32 %v2266_v56, %v965_v60  ;;  %v963_v0 = vsel %vm962_vm3, %v2264_v48, %v959_v59 }
 0x912   :  { %v974_v4 = vmul.f32 %v963_v0, %v940_v36 }
 0x913   :  { %v967_v16 = vmul.f32 0.5, %v966_v61 }
 0x914   :  { %v977_v12 = vmul.f32 %v976_v2, %v974_v4 }
 0x915   :  { %v968_v27 = vsub.f32 1.5, %v967_v16 }
 0x916   :  { %v2663_v15 = vadd.f32 %v979_v9, %v977_v12 }
 0x917   :  { %v969_v5 = vmul.f32 %v2266_v56, %v968_v27 }
 0x919   :  { %v973_v1 = vsel %vm972_vm6, %v2266_v56, %v969_v5 }
 0x91a   :  { %v975_v13 = vmul.f32 %v973_v1, %v941_v40 }
 0x91c   :  { %v978_v14 = vmul.f32 %v976_v2, %v975_v13 }
 0x91e   :  { %v2665_v17 = vadd.f32 %v979_v9, %v978_v14 }
 0x920   :  { %v989_v18 = vpack.c.bf16 %v2665_v17, %v2663_v15 }
 0x922   :  { %2056 = vmatmul.msk.bf16.vlgmr.msrb.gmra.mxu0 %vm50_vm0, %v989_v18 }
 0x99f   :  { %v1019_v11 = vpop.f32.mrf.mxu0 }
 0x9a0   :  { %v1020_v20 = vadd.f32 %v2213_v19, %v1019_v11 }
 0x9a2   :  { %1026 = vrot.lane.b32.xlu1 %v1020_v20, %s2345_s1  ;;  %v1044_v63 = vpack.c.bf16 %v1020_v20, %v1020_v20 }
 0x9a4   :  { %v1053_v25 = vunpack.c.l.b16 %v1044_v63 }
 0x9a6   :  { %v2681_v26 = vpack.c.b16 %v1053_v25, %v1053_v25 }
 0x9a7   :  { %v1021_v7 = vpop.f32.mrf.mxu0 }
 0x9a8   :  { %v1022_v21 = vadd.f32 %v2213_v19, %v1021_v7 }
 0x9aa   :  { %1034 = vrot.lane.b32.xlu2 %v1022_v21, %s2346_s22  ;;  %1028 = vrot.lane.b32.xlu0 %v1022_v21, %s2345_s1  ;;  %v1045_v22 = vpack.c.bf16 %v1022_v21, %v1022_v21 }
 0x9ab   :  { %1032 = vrot.lane.b32.xlu1 %v1020_v20, %s2346_s22 }
 0x9ac   :  { %v1077_v24 = vunpack.c.l.b16 %v1045_v22 }
 0x9ae   :  { %v2679_v49 = vpack.c.b16 %v1077_v24, %v1077_v24 }
 0x9b2   :  { %1040 = vrot.lane.b32.xlu2 %v1022_v21, %s2344_s21  ;;  %1038 = vrot.lane.b32.xlu0 %v1020_v20, %s2344_s21 }
 0x9ba   :  { %1079 = vrot.lane.b32.xlu0 %v2679_v49, %s2347_s23  ;;  %1055 = vrot.lane.b32.xlu2 %v2681_v26, %s2347_s23 }
 0xa04   :  { %v1035_v28 = vpop.permute.xlu2 %1034 }
 0xa05   :  { %v1049_v32 = vpack.c.bf16 %v1035_v28, %v1035_v28 }
 0xa07   :  { %v1173_v33 = vunpack.c.l.b16 %v1049_v32 }
 0xa09   :  { %v2693_v37 = vpack.c.b16 %v1173_v33, %v1173_v33 }
 0xa0c   :  { %v1041_v29 = vpop.permute.xlu2 %1040 }
 0xa0d   :  { %v1051_v38 = vpack.c.bf16 %v1041_v29, %v1041_v29 }
 0xa0f   :  { %v1221_v41 = vunpack.c.l.b16 %v1051_v38 }
 0xa11   :  { %v2701_v44 = vpack.c.b16 %v1221_v41, %v1221_v41 }
 0xa14   :  { %v1027_v50 = vpop.permute.xlu1 %1026  ;;  %v1056_v8 = vpop.permute.xlu2 %1055 }
 0xa15   :  { %v1046_v30 = vpack.c.bf16 %v1027_v50, %v1027_v50  ;;  %v1061_v6 = vsel %vm180_vm8, %v1056_v8, 0 }
 0xa16   :  { %1070 = vmatpush.bf16.xpose.msrb.mxu1 %v1061_v6 }
 0xa17   :  { %v1101_v31 = vunpack.c.l.b16 %v1046_v30 }
 0xa19   :  { %v2688_v62 = vpack.c.b16 %v1101_v31, %v1101_v31 }
 0xa1b   :  { %1103 = vrot.lane.b32.xlu1 %v2688_v62, %s2347_s23 }
 0xa1c   :  { %v1029_v3 = vpop.permute.xlu0 %1028 }
 0xa1d   :  { %v1047_v35 = vpack.c.bf16 %v1029_v3, %v1029_v3  ;;  %2057 = vmatmul.msk.bf16.vlgmr.msrb.gmra.mxu1 %vm180_vm8, %v1044_v63  ;;  %v1033_v23 = vpop.permute.xlu1 %1032 }
 0xa1e   :  { %v1048_v57 = vpack.c.bf16 %v1033_v23, %v1033_v23 }
 0xa1f   :  { %v1125_v36 = vunpack.c.l.b16 %v1047_v35 }
 0xa20   :  { %v1149_v42 = vunpack.c.l.b16 %v1048_v57 }
 0xa21   :  { %v2695_v39 = vpack.c.b16 %v1125_v36, %v1125_v36 }
 0xa22   :  { %v2703_v45 = vpack.c.b16 %v1149_v42, %v1149_v42 }
 0xa23   :  { %1127 = vrot.lane.b32.xlu0 %v2695_v39, %s2347_s23  ;;  %1175 = vrot.lane.b32.xlu1 %v2693_v37, %s2347_s23 }
 0xa24   :  { %v1039_v40 = vpop.permute.xlu0 %1038 }
 0xa25   :  { %v1050_v58 = vpack.c.bf16 %v1039_v40, %v1039_v40 }
 0xa27   :  { %v1197_v43 = vunpack.c.l.b16 %v1050_v58 }
 0xa29   :  { %v2705_v46 = vpack.c.b16 %v1197_v43, %v1197_v43 }
 0xa2b   :  { %1223 = vrot.lane.b32.xlu1 %v2701_v44, %s2347_s23  ;;  %1151 = vrot.lane.b32.xlu0 %v2703_v45, %s2347_s23 }
 0xa2c   :  { %1199 = vrot.lane.b32.xlu2 %v2705_v46, %s2347_s23  ;;  %v1080_v34 = vpop.permute.xlu0 %1079 }
 0xa2d   :  { %v1085_v47 = vsel %vm180_vm8, %v1080_v34, 0 }
 0xa2e   :  { %1094 = vmatpush.bf16.xpose.msrb.mxu2 %v1085_v47 }
 0xa35   :  { %2058 = vmatmul.msk.bf16.vlgmr.msrb.gmra.mxu2 %vm180_vm8, %v1045_v22 }
 0xa86   :  { %v1200_v48 = vpop.permute.xlu2 %1199 }
 0xa87   :  { %v1205_v53 = vsel %vm180_vm8, %v1200_v48, 0 }
 0xa8d   :  { %v1104_v51 = vpop.permute.xlu1 %1103 }
 0xa8e   :  { %v1109_v52 = vsel %vm180_vm8, %v1104_v51, 0 }
 0xa8f   :  { %1118 = vmatpush.bf16.xpose.msrb.mxu3 %v1109_v52 }
 0xa95   :  { %v1128_v54 = vpop.permute.xlu0 %1127  ;;  %v1176_v55 = vpop.permute.xlu1 %1175 }
 0xa96   :  { %v1133_v56 = vsel %vm180_vm8, %v1128_v54, 0  ;;  %v1181_v59 = vsel %vm180_vm8, %v1176_v55, 0  ;;  %2059 = vmatmul.msk.bf16.vlgmr.msrb.gmra.mxu3 %vm180_vm8, %v1046_v30 }
 0xa97   :  { %1214 = vmatpush.bf16.xpose.msra.mxu3 %v1205_v53  ;;  %1142 = vmatpush.bf16.xpose.msra.mxu0 %v1133_v56 }
 0xa98   :  { %1190 = vmatpush.bf16.xpose.msra.mxu2 %v1181_v59 }
 0xa9a   :  { %v1072_v60 = vpop.f32.mrf.mxu1 }
 0xa9b   :  { %v1244_v61 = vsel %vm180_vm8, %v1072_v60, -inf }
 0xa9c   :  { %1245 = vmax.xlane.f32.xlu1 %v1244_v61 }
 0xa9d   :  { %v1152_v0 = vpop.permute.xlu0 %1151  ;;  %v1224_v16 = vpop.permute.xlu1 %1223 }
 0xa9e   :  { %v1157_v27 = vsel %vm180_vm8, %v1152_v0, 0  ;;  %v1229_v2 = vsel %vm180_vm8, %v1224_v16, 0  ;;  %2060 = vmatmul.msk.bf16.vlgmr.msra.gmra.mxu0 %vm180_vm8, %v1047_v35 }
 0xa9f   :  { %2062 = vmatmul.msk.bf16.vlgmr.msra.gmra.mxu2 %vm180_vm8, %v1049_v32  ;;  %1166 = vmatpush.bf16.xpose.msra.mxu1 %v1157_v27 }
 0xaa0   :  { %1238 = vmatpush.bf16.xpose.msrb.mxu0 %v1229_v2 }
 0xaa2   :  { %v1074_v4 = vpop.f32.mrf.mxu1 }
 0xaa6   :  { %2061 = vmatmul.msk.bf16.vlgmr.msra.gmra.mxu1 %vm180_vm8, %v1048_v57  ;;  %2063 = vmatmul.msk.bf16.vlgmr.msra.gmra.mxu3 %vm180_vm8, %v1050_v58 }
 0xaae   :  { %2064 = vmatmul.msk.bf16.vlgmr.msrb.gmra.mxu0 %vm180_vm8, %v1051_v38 }
 0xab5   :  { %1340 = vrot.lane.b32.xlu1 %v2681_v26, %s2348_s24 }
 0xab8   :  { %v1096_v5 = vpop.f32.mrf.mxu2 }
 0xab9   :  { %v1247_v1 = vsel %vm180_vm8, %v1096_v5, -inf }
 0xaba   :  { %1248 = vmax.xlane.f32.xlu2 %v1247_v1 }
 0xac0   :  { %v1098_v9 = vpop.f32.mrf.mxu2 }
 0xb0f   :  { %v1246_v18 = vpop.xlane.xlu1 %1245 }
 0xb10   :  { %v1268_v35 = vsub.f32 %v1072_v60, %v1246_v18 }
 0xb12   :  { %v1276_v23 = vmul.f32 1.442695, %v1268_v35 }
 0xb19   :  { %v1120_v12 = vpop.f32.mrf.mxu3 }
 0xb1a   :  { %v1250_v13 = vsel %vm180_vm8, %v1120_v12, -inf }
 0xb1b   :  { %v1144_v14 = vpop.f32.mrf.mxu0  ;;  %1251 = vmax.xlane.f32.xlu0 %v1250_v13 }
 0xb1c   :  { %v1253_v50 = vsel %vm180_vm8, %v1144_v14, -inf }
 0xb21   :  { %v1122_v19 = vpop.f32.mrf.mxu3 }
 0xb22   :  { %v2732_v11 = vpop.f32.mrf.mxu2 }
 0xb23   :  { %v1146_v20 = vpop.f32.mrf.mxu0  ;;  %v1168_v7 = vpop.f32.mrf.mxu1 }
 0xb24   :  { %v1256_v21 = vsel %vm180_vm8, %v1168_v7, -inf }
 0xb25   :  { %1257 = vmax.xlane.f32.xlu2 %v1256_v21 }
 0xb27   :  { %v1341_v22 = vpop.permute.xlu1 %1340 }
 0xb28   :  { %v1346_v63 = vsel %vm469_vm9, %v1341_v22, 0 }
 0xb29   :  { %v1216_v25 = vpop.f32.mrf.mxu3  ;;  %1355 = vmatpush.bf16.msrb.mxu1 %v1346_v63 }
 0xb2a   :  { %v1194_v24 = vpop.f32.mrf.mxu2  ;;  %v1262_v26 = vsel %vm180_vm8, %v1216_v25, -inf }
 0xb2b   :  { %v1170_v28 = vpop.f32.mrf.mxu1  ;;  %v2737_v29 = vpop.f32.mrf.mxu0  ;;  %1263 = vmax.xlane.f32.xlu1 %v1262_v26 }
 0xb2c   :  { %v1265_v57 = vsel %vm180_vm8, %v2737_v29, -inf }
 0xb2d   :  { %1254 = vmax.xlane.f32.xlu2 %v1253_v50  ;;  %v1249_v8 = vpop.xlane.xlu2 %1248 }
 0xb2e   :  { %v1269_v30 = vsub.f32 %v1096_v5, %v1249_v8 }
 0xb2f   :  { %1382 = vrot.lane.b32.xlu0 %v2688_v62, %s2348_s24  ;;  %v1259_v62 = vsel %vm180_vm8, %v2732_v11, -inf }
 0xb30   :  { %v1278_v6 = vmul.f32 1.442695, %v1269_v30 }
 0xb31   :  { %v1218_v31 = vpop.f32.mrf.mxu3 }
 0xb32   :  { %2267 = vpow2.f32 %v1278_v6 }
 0xb33   :  { %v1242_v32 = vpop.f32.mrf.mxu0  ;;  %2269 = vpow2.f32 %v1276_v23 }
 0xb38   :  { %v2268_v3 = vpop.eup %2267 }
 0xb39   :  { %v1295_v33 = vsel %vm180_vm8, %v2268_v3, 0.0  ;;  %v2270_v36 = vpop.eup %2269 }
 0xb3a   :  { %1296 = vadd.xlane.f32.xlu1 %v1295_v33  ;;  %v1292_v38 = vsel %vm180_vm8, %v2270_v36, 0.0 }
 0xb45   :  { %1361 = vrot.lane.b32.xlu2 %v2679_v49, %s2348_s24 }
 0xb59   :  { %1293 = vadd.xlane.f32.xlu0 %v1292_v38 }
 0xb61   :  { %1260 = vmax.xlane.f32.xlu0 %v1259_v62 }
 0xb69   :  { %1266 = vmax.xlane.f32.xlu0 %v1265_v57 }
 0xb7d   :  { %1403 = vrot.lane.b32.xlu0 %v2695_v39, %s2348_s24 }
 0xb8e   :  { %v1252_v40 = vpop.xlane.xlu0 %1251 }
 0xb8f   :  { %v1270_v49 = vsub.f32 %v1120_v12, %v1252_v40 }
 0xb91   :  { %v1280_v41 = vmul.f32 1.442695, %v1270_v49 }
 0xb93   :  { %2271 = vpow2.f32 %v1280_v41 }
 0xb98   :  { %v1258_v42 = vpop.xlane.xlu2 %1257 }
 0xb99   :  { %v2752_v58 = vpop.eup %2271  ;;  %v1272_v43 = vsub.f32 %v1168_v7, %v1258_v42 }
 0xb9a   :  { %v1298_v34 = vsel %vm180_vm8, %v2752_v58, 0.0 }
 0xb9b   :  { %v1284_v47 = vmul.f32 1.442695, %v1272_v43  ;;  %1299 = vadd.xlane.f32.xlu2 %v1298_v34 }
 0xb9d   :  { %2273 = vpow2.f32 %v1284_v47 }
 0xb9e   :  { %v1264_v48 = vpop.xlane.xlu1 %1263 }
 0xb9f   :  { %v1274_v51 = vsub.f32 %v1216_v25, %v1264_v48 }
 0xba0   :  { %v1255_v52 = vpop.xlane.xlu2 %1254 }
 0xba1   :  { %v1288_v53 = vmul.f32 1.442695, %v1274_v51  ;;  %v1271_v54 = vsub.f32 %v1144_v14, %v1255_v52  ;;  %v1383_v39 = vpop.permute.xlu0 %1382 }
 0xba2   :  { %v1388_v55 = vsel %vm469_vm9, %v1383_v39, 0 }
 0xba3   :  { %v2757_v56 = vpop.eup %2273  ;;  %2275 = vpow2.f32 %v1288_v53  ;;  %v1282_v59 = vmul.f32 1.442695, %v1271_v54  ;;  %1397 = vmatpush.bf16.msrb.mxu3 %v1388_v55 }
 0xba4   :  { %v1304_v60 = vsel %vm180_vm8, %v2757_v56, 0.0 }
 0xba5   :  { %2277 = vpow2.f32 %v1282_v59  ;;  %1305 = vadd.xlane.f32.xlu1 %v1304_v60 }
 0xba8   :  { %v1362_v61 = vpop.permute.xlu2 %1361 }
 0xba9   :  { %v2276_v0 = vpop.eup %2275  ;;  %v1367_v16 = vsel %vm469_vm9, %v1362_v61, 0 }
 0xbaa   :  { %1376 = vmatpush.bf16.msrb.mxu2 %v1367_v16  ;;  %v1310_v27 = vsel %vm180_vm8, %v2276_v0, 0.0 }
 0xbab   :  { %v2278_v2 = vpop.eup %2277  ;;  %1311 = vadd.xlane.f32.xlu0 %v1310_v27 }
 0xbac   :  { %v1301_v4 = vsel %vm180_vm8, %v2278_v2, 0.0 }
 0xbad   :  { %v1297_v5 = vpop.xlane.xlu1 %1296  ;;  %1302 = vadd.xlane.f32.xlu1 %v1301_v4 }
 0xbae   :  { %2279 = vrcp.f32 %v1297_v5 }
 0xbb4   :  { %v2280_v1 = vpop.eup %2279 }
 0xbb5   :  { %v1325_v9 = vmul.f32 %v2280_v1, %v2268_v3 }
 0xbb7   :  { %v1333_v12 = vpack.c.bf16 %v1325_v9, %v1325_v9 }
 0xbb9   :  { %2066 = vmatmul.msk.bf16.vlgmr.msrb.gmra.mxu2 %vm180_vm8, %v1333_v12 }
 0xbbf   :  { %1466 = vrot.lane.b32.xlu0 %v2705_v46, %s2348_s24 }
 0xbc6   :  { %1424 = vrot.lane.b32.xlu1 %v2703_v45, %s2348_s24 }
 0xbc7   :  { %1487 = vrot.lane.b32.xlu0 %v2701_v44, %s2348_s24 }
 0xbcc   :  { %v1294_v13 = vpop.xlane.xlu0 %1293 }
 0xbcd   :  { %2281 = vrcp.f32 %v1294_v13 }
 0xbd3   :  { %v2282_v14 = vpop.eup %2281 }
 0xbd4   :  { %v1324_v18 = vmul.f32 %v2282_v14, %v2270_v36  ;;  %v1261_v19 = vpop.xlane.xlu0 %1260 }
 0xbd5   :  { %v1273_v20 = vsub.f32 %v2732_v11, %v1261_v19 }
 0xbd6   :  { %v1332_v7 = vpack.c.bf16 %v1324_v18, %v1324_v18 }
 0xbd7   :  { %v1286_v21 = vmul.f32 1.442695, %v1273_v20 }
 0xbd8   :  { %2065 = vmatmul.msk.bf16.vlgmr.msrb.gmra.mxu1 %vm180_vm8, %v1332_v7 }
 0xbd9   :  { %2283 = vpow2.f32 %v1286_v21  ;;  %v2158_v21 = vld [vmem:[%s2912_s4 + $0x18] sm:$0xff] }
 0xbdc   :  { %v1267_v22 = vpop.xlane.xlu0 %1266 }
 0xbdd   :  { %v1275_v46 = vsub.f32 %v2737_v29, %v1267_v22  ;;  %v2157_v22 = vld [vmem:[%s2912_s4 + $0x10] sm:$0xff] }
 0xbdf   :  { %v2284_v63 = vpop.eup %2283  ;;  %v1290_v45 = vmul.f32 1.442695, %v1275_v46 }
 0xbe0   :  { %v1307_v24 = vsel %vm180_vm8, %v2284_v63, 0.0 }
 0xbe1   :  { %2285 = vpow2.f32 %v1290_v45  ;;  %1308 = vadd.xlane.f32.xlu2 %v1307_v24 }
 0xbe7   :  { %v2286_v44 = vpop.eup %2285 }
 0xbe8   :  { %v1313_v25 = vsel %vm180_vm8, %v2286_v44, 0.0 }
 0xbe9   :  { %1314 = vadd.xlane.f32.xlu2 %v1313_v25 }
 0xbef   :  { %v1404_v26 = vpop.permute.xlu0 %1403 }
 0xbf0   :  { %v1409_v11 = vsel %vm469_vm9, %v1404_v26, 0 }
 0xbf1   :  { %1418 = vmatpush.bf16.msra.mxu0 %v1409_v11 }
 0xc01   :  { %1445 = vrot.lane.b32.xlu2 %v2693_v37, %s2348_s24 }
 0xc0e   :  { %v1300_v28 = vpop.xlane.xlu2 %1299 }
 0xc0f   :  { %2287 = vrcp.f32 %v1300_v28 }
 0xc15   :  { %v2288_v29 = vpop.eup %2287 }
 0xc16   :  { %v1326_v50 = vmul.f32 %v2288_v29, %v2752_v58 }
 0xc18   :  { %v1334_v8 = vpack.c.bf16 %v1326_v50, %v1326_v50  ;;  %v1306_v30 = vpop.xlane.xlu1 %1305 }
 0xc1a   :  { %2067 = vmatmul.msk.bf16.vlgmr.msrb.gmra.mxu3 %vm180_vm8, %v1334_v8 }
 0xc1e   :  { %v1312_v31 = vpop.xlane.xlu0 %1311 }
 0xc20   :  { %v1303_v6 = vpop.xlane.xlu1 %1302 }
 0xc21   :  { %2289 = vrcp.f32 %v1303_v6 }
 0xc22   :  { %2291 = vrcp.f32 %v1312_v31 }
 0xc23   :  { %2293 = vrcp.f32 %v1306_v30 }
 0xc27   :  { %v2290_v32 = vpop.eup %2289 }
 0xc28   :  { %v1327_v3 = vmul.f32 %v2290_v32, %v2278_v2  ;;  %v2292_v35 = vpop.eup %2291 }
 0xc29   :  { %v1330_v37 = vmul.f32 %v2292_v35, %v2276_v0  ;;  %v2294_v38 = vpop.eup %2293 }
 0xc2a   :  { %v1335_v33 = vpack.c.bf16 %v1327_v3, %v1327_v3  ;;  %v1328_v57 = vmul.f32 %v2294_v38, %v2757_v56  ;;  %v2810_v3 = vld [vmem:[%s2916_s8 + $0x8] sm:$0x3f]  ;;  %s1971_s8 = sshll.u32 %s2921_s13, 4  ;;  %s1972_s8 = int_to_ptr.hbm [resolvable:$true] %s1971_s8 }
 0xc2b   :  { %v1338_v62 = vpack.c.bf16 %v1330_v37, %v1330_v37 }
 0xc2c   :  { %2068 = vmatmul.msk.bf16.vlgmr.msra.gmra.mxu0 %vm180_vm8, %v1335_v33  ;;  %v1336_v58 = vpack.c.bf16 %v1328_v57, %v1328_v57  ;;  %v1544_v33 = vperm.slane %v2810_v3, 0 }
 0xc31   :  { %v1467_v23 = vpop.permute.xlu0 %1466 }
 0xc32   :  { %v1472_v36 = vsel %vm469_vm9, %v1467_v23, 0 }
 0xc33   :  { %1481 = vmatpush.bf16.msra.mxu3 %v1472_v36 }
 0xc36   :  { %2071 = vmatmul.msk.bf16.vlgmr.msra.gmra.mxu3 %vm180_vm8, %v1338_v62 }
 0xc38   :  { %v1425_v40 = vpop.permute.xlu1 %1424 }
 0xc39   :  { %v1430_v49 = vsel %vm469_vm9, %v1425_v40, 0  ;;  %v1488_v41 = vpop.permute.xlu0 %1487 }
 0xc3a   :  { %v1493_v42 = vsel %vm469_vm9, %v1488_v41, 0  ;;  %1439 = vmatpush.bf16.msra.mxu1 %v1430_v49 }
 0xc3b   :  { %1502 = vmatpush.bf16.msrb.mxu0 %v1493_v42 }
 0xc3c   :  { %v1378_v43 = vpop.f32.mrf.mxu2 }
 0xc3d   :  { %2069 = vmatmul.msk.bf16.vlgmr.msra.gmra.mxu1 %vm180_vm8, %v1336_v58 }
 0xc3e   :  { %1566 = vmatpush.bf16.msrb.mxu1 %v2158_v21 }
 0xc42   :  { %1567 = vmatpush.bf16.msrb.mxu1 %v2157_v22 }
 0xc44   :  { %v1380_v34 = vpop.f32.mrf.mxu2 }
 0xc54   :  { %v1309_v47 = vpop.xlane.xlu2 %1308 }
 0xc55   :  { %v1357_v48 = vpop.f32.mrf.mxu1  ;;  %2295 = vrcp.f32 %v1309_v47 }
 0xc5b   :  { %v2296_v53 = vpop.eup %2295 }
 0xc5c   :  { %v1315_v51 = vpop.xlane.xlu2 %1314  ;;  %v1329_v39 = vmul.f32 %v2296_v53, %v2284_v63 }
 0xc5d   :  { %2297 = vrcp.f32 %v1315_v51  ;;  %v1359_v52 = vpop.f32.mrf.mxu1 }
 0xc5e   :  { %v1337_v61 = vpack.c.bf16 %v1329_v39, %v1329_v39  ;;  %v2159_v39 = vld [vmem:[%s2913_s5 + $0x10] sm:$0xff] }
 0xc63   :  { %v2298_v54 = vpop.eup %2297 }
 0xc64   :  { %v1331_v55 = vmul.f32 %v2298_v54, %v2286_v44  ;;  %v1446_v56 = vpop.permute.xlu2 %1445 }
 0xc65   :  { %v1451_v59 = vsel %vm469_vm9, %v1446_v56, 0 }
 0xc66   :  { %v1339_v60 = vpack.c.bf16 %v1331_v55, %v1331_v55  ;;  %1460 = vmatpush.bf16.msra.mxu2 %v1451_v59 }
 0xc68   :  { %2072 = vmatmul.msk.bf16.vlgmr.msrb.gmra.mxu0 %vm180_vm8, %v1339_v60 }
 0xc69   :  { %2070 = vmatmul.msk.bf16.vlgmr.msra.gmra.mxu2 %vm180_vm8, %v1337_v61 }
 0xc9d   :  { %v1399_v0 = vpop.f32.mrf.mxu3 }
 0xca5   :  { %v1401_v16 = vpop.f32.mrf.mxu3 }
 0xca9   :  { %v1420_v27 = vpop.f32.mrf.mxu0 }
 0xcaa   :  { %v2194_v2 = vpack.i.bf16 %v1420_v27, %v1399_v0 }
 0xcac   :  { %2195 = vrot.lane.b32.xlu2 %v2194_v2, %s2349_s25 }
 0xcb1   :  { %v1422_v4 = vpop.f32.mrf.mxu0 }
 0xcb9   :  { %v1483_v5 = vpop.f32.mrf.mxu3 }
 0xcba   :  { %v1441_v1 = vpop.f32.mrf.mxu1 }
 0xcc1   :  { %v1485_v9 = vpop.f32.mrf.mxu3 }
 0xcc2   :  { %v1443_v12 = vpop.f32.mrf.mxu1 }
 0xce5   :  { %v1504_v13 = vpop.f32.mrf.mxu0 }
 0xce6   :  { %v2204_v14 = vpack.i.bf16 %v1504_v13, %v1483_v5 }
 0xce8   :  { %2205 = vrot.lane.b32.xlu0 %v2204_v14, %s2350_s26  ;;  %v1620_v14 = vperm.slane %v2810_v3, 1 }
 0xcec   :  { %v1462_v18 = vpop.f32.mrf.mxu2 }
 0xced   :  { %v2199_v19 = vpack.i.bf16 %v1462_v18, %v1441_v1  ;;  %v1506_v20 = vpop.f32.mrf.mxu0 }
 0xcef   :  { %2200 = vrot.lane.b32.xlu1 %v2199_v19, %s2351_s27 }
 0xcf4   :  { %v1464_v7 = vpop.f32.mrf.mxu2 }
 0xcf5   :  { %v1623_v7 = vperm.slane %v2810_v3, 2 }
 0xd06   :  { %v2196_v46 = vpop.permute.xlu2 %2195 }
 0xd07   :  { %v2198_v63 = vunpack.i.h.bf16 %v2196_v46  ;;  %v2197_v45 = vunpack.i.l.bf16 %v2196_v46 }
 0xd09   :  { %v1533_v11 = vsel %vm180_vm8, %v1378_v43, %v2198_v63  ;;  %v1532_v28 = vsel %vm180_vm8, %v1357_v48, %v2197_v45 }
 0xd5a   :  { %v2206_v24 = vpop.permute.xlu0 %2205 }
 0xd5b   :  { %v2208_v29 = vunpack.i.h.bf16 %v2206_v24  ;;  %v2207_v50 = vunpack.i.l.bf16 %v2206_v24 }
 0xd61   :  { %v2201_v44 = vpop.permute.xlu1 %2200 }
 0xd62   :  { %v2203_v25 = vunpack.i.h.bf16 %v2201_v44  ;;  %v2202_v26 = vunpack.i.l.bf16 %v2201_v44  ;;  %v2214_v44 = vld [vmem:[%s2914_s6 + $0x1] ss:$0 sm:$0xff] }
 0xd64   :  { %v1534_v8 = vsel %vm659_vm10, %v1532_v28, %v2202_v26  ;;  %v1535_v30 = vsel %vm659_vm10, %v1533_v11, %v2203_v25 }
 0xd65   :  { %v1536_v6 = vsel %vm662_vm11, %v1534_v8, %v2207_v50  ;;  %v1537_v31 = vsel %vm662_vm11, %v1535_v30, %v2208_v29 }
 0xd66   :  { %v1543_v32 = vpack.c.bf16 %v1537_v31, %v1536_v6 }
 0xd68   :  { %2085 = vmatmul.msk.bf16.vlgmr.msrb.gmra.mxu1 %vm50_vm0, %v1543_v32 }
 0xde5   :  { %v1569_v35 = vpop.f32.mrf.mxu1 }
 0xde6   :  { %v1570_v37 = vadd.f32 %v1569_v35, %v1544_v33 }
 0xde8   :  { %v1574_v23 = vadd.f32 %v1570_v37, %v2663_v15 }
 0xdea   :  { %v1576_v36 = vsel %vm50_vm0, %v1574_v23, 0.0 }
 0xdeb   :  { %1577 = vadd.xlane.f32.xlu2 %v1576_v36 }
 0xded   :  { %v1571_v38 = vpop.f32.mrf.mxu1 }
 0xdee   :  { %v1572_v62 = vadd.f32 %v1571_v38, %v1544_v33 }
 0xdf0   :  { %v1575_v57 = vadd.f32 %v1572_v62, %v2665_v17  ;;  %v2160_v17 = vld [vmem:[%s2913_s5 + $0x18] sm:$0xff] }
 0xdf1   :  { %1658 = vmatpush.bf16.msrb.mxu2 %v2160_v17 }
 0xdf2   :  { %v1579_v40 = vsel %vm50_vm0, %v1575_v57, 0.0 }
 0xdf3   :  { %1580 = vadd.xlane.f32.xlu1 %v1579_v40 }
 0xdf5   :  { %1659 = vmatpush.bf16.msrb.mxu2 %v2159_v39  ;;  %v2162_v39 = vld [vmem:[%s2915_s7 + $0x28] sm:$0xff] }
 0xe5e   :  { %v1578_v49 = vpop.xlane.xlu2 %1577 }
 0xe5f   :  { %v1582_v41 = vmul.f32 %v1578_v49, %v2431_v10 }
 0xe61   :  { %v1584_v42 = vsub.f32 %v1574_v23, %v1582_v41 }
 0xe63   :  { %v1586_v58 = vmul.f32 %v1584_v42, %v1584_v42 }
 0xe65   :  { %v1588_v43 = vsel %vm50_vm0, %v1586_v58, 0.0 }
 0xe66   :  { %v1581_v34 = vpop.xlane.xlu1 %1580  ;;  %1589 = vadd.xlane.f32.xlu0 %v1588_v43 }
 0xe67   :  { %v1583_v15 = vmul.f32 %v1581_v34, %v2431_v10 }
 0xe69   :  { %v1585_v47 = vsub.f32 %v1575_v57, %v1583_v15  ;;  %v2164_v57 = vld [vmem:[%s2915_s7 + $0x38] sm:$0xff]  ;;  %v2163_v15 = vld [vmem:[%s2915_s7 + $0x30] sm:$0xff] }
 0xe6a   :  { %1796 = vmatpush.bf16.msrb.mxu3 %v2164_v57 }
 0xe6b   :  { %v1587_v48 = vmul.f32 %v1585_v47, %v1585_v47 }
 0xe6d   :  { %v1591_v51 = vsel %vm50_vm0, %v1587_v48, 0.0 }
 0xe6e   :  { %1592 = vadd.xlane.f32.xlu2 %v1591_v51  ;;  %1797 = vmatpush.bf16.msrb.mxu3 %v2163_v15 }
 0xe72   :  { %1798 = vmatpush.bf16.msrb.mxu3 %v2162_v39 }
 0xed9   :  { %v1590_v52 = vpop.xlane.xlu0 %1589 }
 0xeda   :  { %v1594_v53 = vmul.f32 %v1590_v52, %v2431_v10 }
 0xedc   :  { %v1596_v54 = vadd.f32 1e-05, %v1594_v53 }
 0xede   :  { %2299 = vrsqrt.f32 %v1596_v54  ;;  %vm1604_vm9 = vweird.f32 %v1596_v54 }
 0xee1   :  { %v1593_v55 = vpop.xlane.xlu2 %1592 }
 0xee2   :  { %v1595_v56 = vmul.f32 %v1593_v55, %v2431_v10 }
 0xee4   :  { %v2300_v59 = vpop.eup %2299  ;;  %v1597_v60 = vadd.f32 1e-05, %v1595_v56 }
 0xee5   :  { %v1599_v61 = vmul.f32 %v2300_v59, %v1596_v54  ;;  %vm1605_vm8 = vweird.f32 %v2300_v59 }
 0xee6   :  { %2301 = vrsqrt.f32 %v1597_v60  ;;  %vm1606_vm10 = vmor %vm1604_vm9, %vm1605_vm8  ;;  %vm1614_vm7 = vweird.f32 %v1597_v60 }
 0xee7   :  { %v1600_v0 = vmul.f32 %v2300_v59, %v1599_v61 }
 0xee9   :  { %v1601_v16 = vmul.f32 0.5, %v1600_v0  ;;  %v2161_v0 = vld [vmem:[%s2915_s7 + $0x20] sm:$0xff] }
 0xeea   :  { %1799 = vmatpush.bf16.msrb.mxu3 %v2161_v0 }
 0xeeb   :  { %v1602_v27 = vsub.f32 1.5, %v1601_v16 }
 0xeec   :  { %v2302_v2 = vpop.eup %2301 }
 0xeed   :  { %v1603_v4 = vmul.f32 %v2300_v59, %v1602_v27  ;;  %v1609_v5 = vmul.f32 %v2302_v2, %v1597_v60  ;;  %vm1615_vm11 = vweird.f32 %v2302_v2 }
 0xeee   :  { %vm1616_vm12 = vmor %vm1614_vm7, %vm1615_vm11 }
 0xeef   :  { %v1610_v1 = vmul.f32 %v2302_v2, %v1609_v5  ;;  %v1607_v9 = vsel %vm1606_vm10, %v2300_v59, %v1603_v4 }
 0xef0   :  { %v1618_v18 = vmul.f32 %v1607_v9, %v1584_v42 }
 0xef1   :  { %v1611_v12 = vmul.f32 0.5, %v1610_v1 }
 0xef2   :  { %v1621_v21 = vmul.f32 %v1620_v14, %v1618_v18 }
 0xef3   :  { %v1612_v13 = vsub.f32 1.5, %v1611_v12 }
 0xef4   :  { %v2831_v63 = vadd.f32 %v1623_v7, %v1621_v21 }
 0xef5   :  { %v1613_v19 = vmul.f32 %v2302_v2, %v1612_v13 }
 0xef7   :  { %v1617_v20 = vsel %vm1616_vm12, %v2302_v2, %v1613_v19  ;;  %vm1861_vm12 = vcmask 1040384  }
 0xef8   :  { %v1619_v22 = vmul.f32 %v1617_v20, %v1585_v47 }
 0xefa   :  { %v1622_v46 = vmul.f32 %v1620_v14, %v1619_v22 }
 0xefc   :  { %v2833_v45 = vadd.f32 %v1623_v7, %v1622_v46 }
 0xefe   :  { %v1631_v24 = vpack.c.bf16 %v2833_v45, %v2831_v63 }
 0xf00   :  { %2099 = vmatmul.msk.bf16.vlgmr.msrb.gmra.mxu2 %vm50_vm0, %v1631_v24 }
 0xf83   :  { %v1661_v25 = vpop.f32.mrf.mxu2 }
 0xf84   :  { %v2841_v26 = vadd.f32 %v2214_v44, %v1661_v25 }
 0xf86   :  { %v2844_v11 = vmul.f32 0.70710677, %v2841_v26 }
 0xf88   :  { %v1670_v28 = vmul.f32 %v2844_v11, %v2844_v11 }
 0xf8a   :  { %v1671_v29 = vmin.f32 %v1670_v28, 16.0 }
 0xf8b   :  { %v1663_v50 = vpop.f32.mrf.mxu2 }
 0xf8c   :  { %v1672_v8 = vmul.f32 2.1237322e-06, %v1671_v29  ;;  %v1683_v30 = vmul.f32 3.8918573e-05, %v1671_v29  ;;  %v2848_v6 = vadd.f32 %v2214_v44, %v1663_v50 }
 0xf8e   :  { %v1673_v31 = vadd.f32 0.00028619796, %v1672_v8  ;;  %v1684_v32 = vadd.f32 0.001143296, %v1683_v30  ;;  %v2851_v33 = vmul.f32 0.70710677, %v2848_v6 }
 0xf90   :  { %v1685_v35 = vmul.f32 %v1684_v32, %v1671_v29  ;;  %v1710_v37 = vmul.f32 %v2851_v33, %v2851_v33  ;;  %v1674_v23 = vmul.f32 %v1673_v31, %v1671_v29 }
 0xf92   :  { %v1686_v36 = vadd.f32 0.014752088, %v1685_v35  ;;  %v1711_v38 = vmin.f32 %v1710_v37, 16.0  ;;  %v1675_v41 = vadd.f32 0.0036580483, %v1674_v23 }
 0xf94   :  { %v1687_v62 = vmul.f32 %v1686_v36, %v1671_v29  ;;  %v1712_v40 = vmul.f32 2.1237322e-06, %v1711_v38  ;;  %v1723_v49 = vmul.f32 3.8918573e-05, %v1711_v38  ;;  %v1676_v51 = vmul.f32 %v1675_v41, %v1671_v29 }
 0xf96   :  { %v1688_v42 = vadd.f32 0.112945676, %v1687_v62  ;;  %v1713_v58 = vadd.f32 0.00028619796, %v1712_v40  ;;  %v1724_v43 = vadd.f32 0.001143296, %v1723_v49 }
 0xf97   :  { %v1677_v56 = vadd.f32 0.05243302, %v1676_v51 }
 0xf98   :  { %v1689_v34 = vmul.f32 %v1688_v42, %v1671_v29  ;;  %v1714_v47 = vmul.f32 %v1713_v58, %v1711_v38  ;;  %v1725_v48 = vmul.f32 %v1724_v43, %v1711_v38  ;;  %v1666_v43 = vmul.f32 0.5, %v2841_v26 }
 0xf99   :  { %v1678_v27 = vmul.f32 %v1677_v56, %v1671_v29 }
 0xf9a   :  { %v1690_v17 = vadd.f32 0.4994258, %v1689_v34  ;;  %v1715_v52 = vadd.f32 0.0036580483, %v1714_v47  ;;  %v1726_v53 = vadd.f32 0.014752088, %v1725_v48 }
 0xf9b   :  { %v1679_v9 = vadd.f32 0.18741608, %v1678_v27  ;;  %v1667_v34 = vmul.f32 0.5, %v2848_v6 }
 0xf9c   :  { %v1691_v54 = vmul.f32 %v1690_v17, %v1671_v29  ;;  %v1727_v55 = vmul.f32 %v1726_v53, %v1711_v38  ;;  %v1716_v60 = vmul.f32 %v1715_v52, %v1711_v38  ;;  %v1764_v17 = vperm.slane %v2810_v3, 3 }
 0xf9d   :  { %v1680_v19 = vmul.f32 %v1679_v9, %v1671_v29 }
 0xf9e   :  { %v1692_v59 = vadd.f32 1.0, %v1691_v54  ;;  %v1728_v61 = vadd.f32 0.112945676, %v1727_v55  ;;  %v1717_v2 = vadd.f32 0.05243302, %v1716_v60 }
 0xf9f   :  { %v1681_v24 = vadd.f32 1.1283791, %v1680_v19 }
 0xfa0   :  { %2303 = vrcp.f32 %v1692_v59  ;;  %v1729_v16 = vmul.f32 %v1728_v61, %v1711_v38  ;;  %v1718_v13 = vmul.f32 %v1717_v2, %v1711_v38  ;;  %v1704_v7 = vand.u32 2147483648, %v1692_v59 }
 0xfa1   :  { %v1702_v22 = vand.u32 2147483647, %v1692_v59  ;;  %vm1698_vm14 = vweird.f32 %v1692_v59  ;;  %v1682_v31 = vmul.f32 %v1681_v24, %v2844_v11 }
 0xfa2   :  { %v1730_v4 = vadd.f32 0.4994258, %v1729_v16  ;;  %v1719_v21 = vadd.f32 0.18741608, %v1718_v13  ;;  %v1705_v28 = vor.u32 1.1754944e-38, %v1704_v7 }
 0xfa3   :  { %vm1703_vm2 = vcmp.eq.f32.partialorder %v1702_v22, 8.507059e+37 }
 0xfa4   :  { %v1731_v5 = vmul.f32 %v1730_v4, %v1711_v38  ;;  %v1720_v50 = vmul.f32 %v1719_v21, %v1711_v38 }
 0xfa6   :  { %v2304_v1 = vpop.eup %2303  ;;  %v1732_v14 = vadd.f32 1.0, %v1731_v5  ;;  %v1721_v29 = vadd.f32 1.1283791, %v1720_v50 }
 0xfa7   :  { %v1694_v12 = vmul.f32 %v2304_v1, %v1692_v59  ;;  %vm1699_vm13 = vweird.f32 %v2304_v1 }
 0xfa8   :  { %2305 = vrcp.f32 %v1732_v14  ;;  %vm1700_vm1 = vmor %vm1698_vm14, %vm1699_vm13  ;;  %v1744_v35 = vand.u32 2147483648, %v1732_v14  ;;  %v1742_v36 = vand.u32 2147483647, %v1732_v14  ;;  %vm1738_vm4 = vweird.f32 %v1732_v14 }
 0xfa9   :  { %v1695_v18 = vsub.f32 1.0, %v1694_v12  ;;  %v1722_v49 = vmul.f32 %v1721_v29, %v2851_v33  ;;  %v2165_v12 = vld [vmem:[%s2917_s9] sm:$0xff]  ;;  %vm1938_vm13 = vcmask 1041408  }
 0xfaa   :  { %v1745_v57 = vor.u32 1.1754944e-38, %v1744_v35  ;;  %vm1743_vm6 = vcmp.eq.f32.partialorder %v1742_v36, 8.507059e+37  ;;  %v1855_v35 = vperm.slane %v2810_v3, 5 }
 0xfab   :  { %v1696_v20 = vmul.f32 %v2304_v1, %v1695_v18 }
 0xfad   :  { %v1697_v46 = vadd.f32 %v2304_v1, %v1696_v20 }
 0xfae   :  { %v2306_v44 = vpop.eup %2305 }
 0xfaf   :  { %v1701_v25 = vsel %vm1700_vm1, %v2304_v1, %v1697_v46  ;;  %v1734_v8 = vmul.f32 %v2306_v44, %v1732_v14  ;;  %vm1739_vm3 = vweird.f32 %v2306_v44  ;;  %v2166_v1 = vld [vmem:[%s2917_s9 + $0x8] sm:$0xff] }
 0xfb0   :  { %v1706_v30 = vsel %vm1703_vm2, %v1705_v28, %v1701_v25  ;;  %vm1740_vm5 = vmor %vm1738_vm4, %vm1739_vm3  ;;  %1893 = vmatpush.bf16.msra.mxu0 %v2166_v1 }
 0xfb1   :  { %v1735_v32 = vsub.f32 1.0, %v1734_v8  ;;  %v1707_v37 = vmul.f32 %v1706_v30, %v1682_v31 }
 0xfb3   :  { %v1736_v23 = vmul.f32 %v2306_v44, %v1735_v32  ;;  %v2100_v40 = vclamps-f32 %v1707_v37, 1.0 }
 0xfb4   :  { %1894 = vmatpush.bf16.msra.mxu0 %v2165_v12 }
 0xfb5   :  { %v1737_v62 = vadd.f32 %v2306_v44, %v1736_v23  ;;  %v1750_v58 = vadd.f32 1.0, %v2100_v40 }
 0xfb7   :  { %v1741_v38 = vsel %vm1740_vm5, %v2306_v44, %v1737_v62  ;;  %v1752_v47 = vmul.f32 %v1750_v58, %v1666_v43 }
 0xfb8   :  { %v1746_v41 = vsel %vm1743_vm6, %v1745_v57, %v1741_v38  ;;  %v2168_v38 = vld [vmem:[%s2919_s11 + $0x8] sm:$0xff] }
 0xfb9   :  { %v1747_v42 = vmul.f32 %v1746_v41, %v1722_v49  ;;  %1931 = vmatpush.bf16.msra.mxu1 %v2168_v38  ;;  %v2167_v41 = vld [vmem:[%s2919_s11] sm:$0xff] }
 0xfbb   :  { %v2101_v11 = vclamps-f32 %v1747_v42, 1.0 }
 0xfbd   :  { %v1751_v15 = vadd.f32 1.0, %v2101_v11  ;;  %1932 = vmatpush.bf16.msra.mxu1 %v2167_v41 }
 0xfbf   :  { %v1753_v48 = vmul.f32 %v1751_v15, %v1667_v34  ;;  %v2216_v15 = vld [vmem:[%s2920_s12] ss:$0 sm:$0xff] }
 0xfc1   :  { %v1763_v51 = vpack.c.bf16 %v1753_v48, %v1752_v47 }
 0xfc3   :  { %2126 = vmatmul.msk.bf16.vlgmr.msrb.gmra.mxu3 %vm912_vm15, %v1763_v51 }
0x1046   :  { %v1801_v52 = vpop.f32.mrf.mxu3 }
0x1047   :  { %v1802_v33 = vadd.f32 %v1801_v52, %v1764_v17 }
0x1049   :  { %v1806_v53 = vadd.f32 %v1802_v33, %v2831_v63 }
0x104b   :  { %v1808_v54 = vsel %vm50_vm0, %v1806_v53, 0.0 }
0x104c   :  { %1809 = vadd.xlane.f32.xlu0 %v1808_v54 }
0x104e   :  { %v1803_v39 = vpop.f32.mrf.mxu3 }
0x104f   :  { %v1804_v55 = vadd.f32 %v1803_v39, %v1764_v17 }
0x1051   :  { %v1807_v26 = vadd.f32 %v1804_v55, %v2833_v45 }
0x1053   :  { %v1811_v6 = vsel %vm50_vm0, %v1807_v26, 0.0 }
0x1054   :  { %1812 = vadd.xlane.f32.xlu1 %v1811_v6 }
0x10bf   :  { %v1810_v56 = vpop.xlane.xlu0 %1809 }
0x10c0   :  { %v1814_v59 = vmul.f32 %v1810_v56, %v2431_v10 }
0x10c2   :  { %v1816_v60 = vsub.f32 %v1806_v53, %v1814_v59 }
0x10c4   :  { %v1818_v61 = vmul.f32 %v1816_v60, %v1816_v60 }
0x10c6   :  { %v1820_v0 = vsel %vm50_vm0, %v1818_v61, 0.0 }
0x10c7   :  { %v1813_v16 = vpop.xlane.xlu1 %1812  ;;  %1821 = vadd.xlane.f32.xlu1 %v1820_v0 }
0x10c8   :  { %v1815_v63 = vmul.f32 %v1813_v16, %v2431_v10 }
0x10ca   :  { %v1817_v27 = vsub.f32 %v1807_v26, %v1815_v63 }
0x10cc   :  { %v1819_v2 = vmul.f32 %v1817_v27, %v1817_v27 }
0x10ce   :  { %v1823_v4 = vsel %vm50_vm0, %v1819_v2, 0.0 }
0x10cf   :  { %1824 = vadd.xlane.f32.xlu2 %v1823_v4 }
0x113a   :  { %v1822_v45 = vpop.xlane.xlu1 %1821 }
0x113b   :  { %v1826_v5 = vmul.f32 %v1822_v45, %v2431_v10 }
0x113d   :  { %v1828_v9 = vadd.f32 1e-05, %v1826_v5 }
0x113f   :  { %2307 = vrsqrt.f32 %v1828_v9  ;;  %vm1836_vm8 = vweird.f32 %v1828_v9 }
0x1142   :  { %v1825_v13 = vpop.xlane.xlu2 %1824 }
0x1143   :  { %v1827_v14 = vmul.f32 %v1825_v13, %v2431_v10  ;;  %v1852_v10 = vperm.slane %v2810_v3, 4  ;;  %v2215_v3 = vld [vmem:[%s2918_s10] ss:$0 sm:$0xff]  ;;  %s2352_s10 = smov [#allocation2]  }
0x1144   :  { %s1969_s11 = sshll.u32 %s2352_s10, 4  ;;  %s1970_s11 = int_to_ptr.vmem [resolvable:$true] %s1969_s11 }
0x1145   :  { %v2308_v18 = vpop.eup %2307  ;;  %v1829_v19 = vadd.f32 1e-05, %v1827_v14 }
0x1146   :  { %v1831_v20 = vmul.f32 %v2308_v18, %v1828_v9  ;;  %vm1837_vm15 = vweird.f32 %v2308_v18 }
0x1147   :  { %2309 = vrsqrt.f32 %v1829_v19  ;;  %vm1838_vm9 = vmor %vm1836_vm8, %vm1837_vm15  ;;  %vm1846_vm11 = vweird.f32 %v1829_v19 }
0x1148   :  { %v1832_v7 = vmul.f32 %v2308_v18, %v1831_v20 }
0x114a   :  { %v1833_v21 = vmul.f32 0.5, %v1832_v7 }
0x114c   :  { %v1834_v22 = vsub.f32 1.5, %v1833_v21 }
0x114d   :  { %v2310_v46 = vpop.eup %2309 }
0x114e   :  { %v1841_v24 = vmul.f32 %v2310_v46, %v1829_v19  ;;  %v1835_v44 = vmul.f32 %v2308_v18, %v1834_v22  ;;  %vm1847_vm10 = vweird.f32 %v2310_v46 }
0x114f   :  { %vm1848_vm7 = vmor %vm1846_vm11, %vm1847_vm10 }
0x1150   :  { %v1842_v25 = vmul.f32 %v2310_v46, %v1841_v24  ;;  %v1839_v50 = vsel %vm1838_vm9, %v2308_v18, %v1835_v44 }
0x1151   :  { %v1850_v31 = vmul.f32 %v1839_v50, %v1816_v60 }
0x1152   :  { %v1843_v28 = vmul.f32 0.5, %v1842_v25 }
0x1153   :  { %v1853_v37 = vmul.f32 %v1852_v10, %v1850_v31 }
0x1154   :  { %v1844_v8 = vsub.f32 1.5, %v1843_v28 }
0x1155   :  { %v1856_v62 = vadd.f32 %v1855_v35, %v1853_v37 }
0x1156   :  { %v1845_v30 = vmul.f32 %v2310_v46, %v1844_v8 }
0x1158   :  { %v1849_v32 = vsel %vm1848_vm7, %v2310_v46, %v1845_v30 }
0x1159   :  { %v1851_v29 = vmul.f32 %v1849_v32, %v1817_v27 }
0x115b   :  { %v1854_v23 = vmul.f32 %v1852_v10, %v1851_v29 }
0x115d   :  { %v1857_v36 = vadd.f32 %v1855_v35, %v1854_v23 }
0x115f   :  { %v1859_v57 = vrot.slane %v1857_v36, 7 }
0x1161   :  { %v1862_v40 = vsel %vm1861_vm12, %v1856_v62, %v1859_v57 }
0x1162   :  { %v1867_v49 = vpack.c.bf16 %v1862_v40, %v1862_v40 }
0x1164   :  { %2135 = vmatmul.msk.bf16.vlgmr.msra.gmra.mxu0 %vm50_vm0, %v1867_v49 }
0x11e1   :  { %v1896_v42 = vpop.f32.mrf.mxu0 }
0x11e2   :  { %v1897_v58 = vadd.f32 %v2215_v3, %v1896_v42 }
0x11e4   :  { %2311 = vtanh.f32 %v1897_v58 }
0x11e9   :  { %v1898_v11 = vpop.f32.mrf.mxu0 }
0x11ea   :  { %v2312_v43 = vpop.eup %2311 }
0x11eb   :  { %v1905_v34 = vpack.c.bf16 %v2312_v43, %v2312_v43 }
0x11ed   :  { %2144 = vmatmul.msk.bf16.vlgmr.msra.gmra.mxu1 %vm50_vm0, %v1905_v34 }
0x126a   :  { %v1934_v47 = vpop.f32.mrf.mxu1 }
0x126b   :  { %v1935_v48 = vadd.f32 %v2216_v15, %v1934_v47 }
0x126d   :  { %v1939_v51 = vsel %vm1938_vm13, %v1935_v48, -inf }
0x126e   :  { %1940 = vmax.xlane.f32.xlu0 %v1939_v51 }
0x1272   :  { %v1936_v17 = vpop.f32.mrf.mxu1 }
0x12e1   :  { %v1941_v52 = vpop.xlane.xlu0 %1940 }
0x12e2   :  { %v1942_v33 = vsub.f32 %v1935_v48, %v1941_v52 }
0x12e4   :  { %v1943_v53 = vmul.f32 1.442695, %v1942_v33 }
0x12e6   :  { %2313 = vpow2.f32 %v1943_v53 }
0x12ec   :  { %v2314_v54 = vpop.eup %2313 }
0x12ed   :  { %v1945_v39 = vsel %vm1938_vm13, %v2314_v54, 0.0 }
0x12ee   :  { %1946 = vadd.xlane.f32.xlu2 %v1945_v39 }
0x1361   :  { %v1947_v55 = vpop.xlane.xlu2 %1946 }
0x1362   :  { %2315 = vrcp.f32 %v1947_v55  ;;  %v1959_v59 = vand.u32 2147483648, %v1947_v55  ;;  %v1957_v61 = vand.u32 2147483647, %v1947_v55  ;;  %vm1953_vm14 = vweird.f32 %v1947_v55 }
0x1364   :  { %v1960_v16 = vor.u32 1.1754944e-38, %v1959_v59  ;;  %vm1958_vm2 = vcmp.eq.f32.partialorder %v1957_v61, 8.507059e+37 }
0x1368   :  { %v2316_v26 = vpop.eup %2315 }
0x1369   :  { %v1949_v6 = vmul.f32 %v2316_v26, %v1947_v55  ;;  %vm1954_vm0 = vweird.f32 %v2316_v26 }
0x136a   :  { %vm1955_vm1 = vmor %vm1953_vm14, %vm1954_vm0 }
0x136b   :  { %v1950_v56 = vsub.f32 1.0, %v1949_v6 }
0x136d   :  { %v1951_v60 = vmul.f32 %v2316_v26, %v1950_v56 }
0x136f   :  { %v1952_v0 = vadd.f32 %v2316_v26, %v1951_v60 }
0x1371   :  { %v1956_v63 = vsel %vm1955_vm1, %v2316_v26, %v1952_v0 }
0x1372   :  { %v1961_v27 = vsel %vm1958_vm2, %v1960_v16, %v1956_v63 }
0x1373   :  { %v1962_v2 = vmul.f32 %v2314_v54, %v1961_v27 }
0x1375   :  { %1963 = vst [vmem:[#allocation2] sm:$0x3] %v1962_v2 }
0x1376   :  { %1974 = dma.vmem_to_hbm [thread:$0]  %s1970_s11, 32, %s1972_s8, [#allocation3]  }
0x1377   :  { %2341 = dma.done.wait [#allocation3], 32  }
0x1378   :  { %2342 = vsyncadd [#allocation3], 4294967264 }
0x1379   :  { %1979 = vsyncpa [#allocation3], 1 }

</bundles_post_ra>
